<compile_context>
chip_gen: v7x
topology: tpu7x:2x2x1
jax: 0.10.0
libtpu: 0.0.40
codegen_flags: <defaults>
</compile_context>

<pallas_src>
import functools
import inspect
import math

import jax
import jax.numpy as jnp
import numpy as np
from jax.experimental import pallas as pl
from jax.experimental.pallas import tpu as pltpu


def _supports_pipeline_mode():
    try:
        return "pipeline_mode" in inspect.signature(pl.BlockSpec).parameters
    except (TypeError, ValueError):
        return False


_HAS_PIPELINE_MODE = _supports_pipeline_mode()


def _layernorm(v, gamma, beta, eps):
    mu = jnp.mean(v, axis=-1, keepdims=True)
    var = jnp.mean((v - mu) ** 2, axis=-1, keepdims=True)
    return (v - mu) * jax.lax.rsqrt(var + eps) * gamma + beta


def encoder_layer_kernel(
    # inputs
    x_ref,
    wq_ref, bq_ref, wk_ref, bk_ref, wv_ref, bv_ref, wo_ref,
    bo_ref, g1_ref, be1_ref, w1_ref, bf1_ref, w2_ref, bf2_ref, g2_ref, be2_ref,
    # outputs
    out_ref, prob_ref,
    # scratch
    acc_ref,
    *, batch_block, seq_len, eps):
    h = pl.program_id(1)
    S = seq_len

    @pl.when(h == 0)
    def _():
        acc_ref[...] = jnp.zeros_like(acc_ref)

    xb = x_ref[...].astype(jnp.bfloat16)                       # (rows, D) bf16

    # Per-head Q/K/V projection: whole row block per MXU push, bf16 in / f32 acc.
    # 1/sqrt(head_dim) is already folded into wq / bq by the wrapper.
    q = jnp.dot(xb, wq_ref[0], preferred_element_type=jnp.float32) + bq_ref[0]
    k = jnp.dot(xb, wk_ref[0], preferred_element_type=jnp.float32) + bk_ref[0]
    v = jnp.dot(xb, wv_ref[0], preferred_element_type=jnp.float32) + bv_ref[0]
    qb = q.astype(jnp.bfloat16)                                # cast once, slice after
    kb = k.astype(jnp.bfloat16)
    vb = v.astype(jnp.bfloat16)

    # Scores / softmax / context are per batch element (trip count = batch_block,
    # which defaults to 1, so this loop normally disappears).
    for b in range(batch_block):
        r0 = b * S
        qh = qb[r0:r0 + S]
        kh = kb[r0:r0 + S]
        vh = vb[r0:r0 + S]
        # scores = qh @ kh^T without materializing a transpose
        s = jax.lax.dot_general(qh, kh, (((1,), (1,)), ((), ())),
                                preferred_element_type=jnp.float32)        # (S, S) f32
        m = jnp.max(s, axis=-1, keepdims=True)
        e = jnp.exp(s - m)
        p = e * pl.reciprocal(jnp.sum(e, axis=-1, keepdims=True), approx=True)
        prob_ref[b, 0] = p                                     # per-(batch, head) store
        ctx = jnp.dot(p.astype(jnp.bfloat16), vh,
                      preferred_element_type=jnp.float32)                  # (S, hd)
        # ctx_full @ wo == sum_h ctx_h @ wo[h]  (wo pre-reshaped to (H, hd, D))
        contrib = jnp.dot(ctx.astype(jnp.bfloat16), wo_ref[0],
                          preferred_element_type=jnp.float32)              # (S, D)
        acc_ref[r0:r0 + S, :] = acc_ref[r0:r0 + S, :] + contrib

    # Last head: residual + LN1, FFN, residual + LN2 on the full row block.
    @pl.when(h == pl.num_programs(1) - 1)
    def _():
        attn_out = acc_ref[...] + bo_ref[...]                              # (rows, D)
        y1 = _layernorm(x_ref[...] + attn_out, g1_ref[...], be1_ref[...], eps)
        # TODO(synk): dropout (drop_prob) is an eval-mode no-op; training-mode dropout
        # and an attn_mask/padding-mask path are not implemented.
        h1 = jnp.maximum(
            jnp.dot(y1.astype(jnp.bfloat16), w1_ref[...],
                    preferred_element_type=jnp.float32) + bf1_ref[...], 0.0)
        ffn = jnp.dot(h1.astype(jnp.bfloat16), w2_ref[...],
                      preferred_element_type=jnp.float32) + bf2_ref[...]
        out_ref[...] = _layernorm(y1 + ffn, g2_ref[...], be2_ref[...], eps)


def encoder_layer(x, params, *, num_heads, eps=1e-5, batch_block=1):
    B, S, D = x.shape
    hd = D // num_heads
    assert num_heads * hd == D, "embed_dim must be divisible by num_heads"
    if batch_block is None:
        batch_block = 1
    assert B % batch_block == 0
    n_blocks = B // batch_block
    rows = batch_block * S
    assert n_blocks == 1 or rows % 8 == 0, "row block must be sublane (8) aligned"

    scale = 1.0 / math.sqrt(hd)
    bf16 = jnp.bfloat16

    def per_head_w(w):        # (D, D) -> (H, D, hd)
        return jnp.transpose(w.reshape(D, num_heads, hd), (1, 0, 2))

    def per_head_b(b):        # (1, D) -> (H, 1, hd)
        return jnp.transpose(b.reshape(1, num_heads, hd), (1, 0, 2))

    head_weights = [
        per_head_w(params["wq"] * scale).astype(bf16),
        per_head_b(params["bq"] * scale),
        per_head_w(params["wk"]).astype(bf16), per_head_b(params["bk"]),
        per_head_w(params["wv"]).astype(bf16), per_head_b(params["bv"]),
        params["wo"].reshape(num_heads, hd, D).astype(bf16),
    ]
    const_weights = [
        params["bo"], params["g1"], params["be1"],
        params["w1"].astype(bf16), params["bf1"],
        params["w2"].astype(bf16), params["bf2"],
        params["g2"], params["be2"],
    ]

    def head_spec(arr):       # one head slab per grid step along the h axis
        return pl.BlockSpec((1,) + arr.shape[1:], lambda i, h: (h, 0, 0))

    def const_spec(arr):      # constant block index -> single-buffer if supported
        nd = arr.ndim
        kwargs = {"pipeline_mode": pl.Buffered(1)} if _HAS_PIPELINE_MODE else {}
        return pl.BlockSpec(arr.shape, lambda i, h, _nd=nd: (0,) * _nd, **kwargs)

    kernel = functools.partial(
        encoder_layer_kernel, batch_block=batch_block, seq_len=S, eps=eps)

    x2d = x.reshape(B * S, D)             # lane-dense 2-D activation slab

    grid_spec = pltpu.PrefetchScalarGridSpec(
        num_scalar_prefetch=0,
        grid=(n_blocks, num_heads),       # reduction (head) axis last
        in_specs=[pl.BlockSpec((rows, D), lambda i, h: (i, 0))]
        + [head_spec(w) for w in head_weights]
        + [const_spec(w) for w in const_weights],
        out_specs=[
            pl.BlockSpec((rows, D), lambda i, h: (i, 0)),
            pl.BlockSpec((batch_block, 1, S, S), lambda i, h: (i, h, 0, 0)),
        ],
        scratch_shapes=[pltpu.VMEM((rows, D), jnp.float32)],
    )

    out2d, prob = pl.pallas_call(
        kernel,
        out_shape=(
            jax.ShapeDtypeStruct((B * S, D), jnp.float32),
            jax.ShapeDtypeStruct((B, num_heads, S, S), jnp.float32),
        ),
        grid_spec=grid_spec,
        compiler_params=pltpu.CompilerParams(
            dimension_semantics=("parallel", "arbitrary"),
            vmem_limit_bytes=64 * 1024 * 1024),
    )(x2d, *head_weights, *const_weights)
    return out2d.reshape(B, S, D), prob


def reference(x, p, *, num_heads, eps=1e-5):
    """Pure-JAX f32 reference (faithful to the PyTorch module)."""
    B, S, D = x.shape
    hd = D // num_heads
    q = x @ p["wq"] + p["bq"]
    k = x @ p["wk"] + p["bk"]
    v = x @ p["wv"] + p["bv"]

    def split(t):  # (B,S,D) -> (B,H,S,hd)
        return t.reshape(B, S, num_heads, hd).transpose(0, 2, 1, 3)

    qh, kh, vh = split(q), split(k), split(v)
    scores = jnp.einsum("bhqd,bhkd->bhqk", qh, kh) / math.sqrt(hd)
    prob = jax.nn.softmax(scores, axis=-1)
    ctx = jnp.einsum("bhqk,bhkd->bhqd", prob, vh)
    ctx = ctx.transpose(0, 2, 1, 3).reshape(B, S, D)
    attn_out = ctx @ p["wo"] + p["bo"]

    def ln(t, g, b):
        mu = jnp.mean(t, -1, keepdims=True)
        var = jnp.mean((t - mu) ** 2, -1, keepdims=True)
        return (t - mu) / jnp.sqrt(var + eps) * g + b

    y1 = ln(x + attn_out, p["g1"], p["be1"])
    ffn = jnp.maximum(y1 @ p["w1"] + p["bf1"], 0.0) @ p["w2"] + p["bf2"]
    return ln(y1 + ffn, p["g2"], p["be2"]), prob


if __name__ == "__main__":
    # Small, deterministic configuration consistent with the module.
    B, S, D, F, H = 2, 8, 32, 64, 4
    eps = 1e-5

    key = jax.random.PRNGKey(0)
    keys = jax.random.split(key, 16)

    def lin(kw, kb, din, dout, scale_):
        return (jax.random.normal(kw, (din, dout), jnp.float32) * scale_,
                jax.random.normal(kb, (1, dout), jnp.float32) * 0.01)

    wq, bq = lin(keys[0], keys[1], D, D, 0.05)
    wk, bk = lin(keys[2], keys[3], D, D, 0.05)
    wv, bv = lin(keys[4], keys[5], D, D, 0.05)
    wo, bo = lin(keys[6], keys[7], D, D, 0.05)
    w1, bf1 = lin(keys[8], keys[9], D, F, 0.05)
    w2, bf2 = lin(keys[10], keys[11], F, D, 0.05)

    params = dict(
        wq=wq, bq=bq, wk=wk, bk=bk, wv=wv, bv=bv, wo=wo, bo=bo,
        g1=jnp.ones((1, D), jnp.float32), be1=jnp.zeros((1, D), jnp.float32),
        w1=w1, bf1=bf1, w2=w2, bf2=bf2,
        g2=jnp.ones((1, D), jnp.float32), be2=jnp.zeros((1, D), jnp.float32),
    )

    x = jax.random.normal(keys[12], (B, S, D), jnp.float32)

    out, prob = encoder_layer(x, params, num_heads=H, eps=eps)
    out = jax.block_until_ready(out)
    prob = jax.block_until_ready(prob)

    ref_out, ref_prob = reference(x, params, num_heads=H, eps=eps)
    # bf16 matmul operands (f32 accumulate) + approx softmax reciprocal => relaxed tolerance
    np.testing.assert_allclose(np.asarray(out), np.asarray(ref_out), rtol=1e-2, atol=1e-2)
    np.testing.assert_allclose(np.asarray(prob), np.asarray(ref_prob), rtol=1e-2, atol=1e-2)

    print("KERNEL_OK")
</pallas_src>

<mosaic_0001>
module attributes {stable_mosaic.version = 11 : i64} {
  func.func @encoder_layer_kernel(%arg0: i32, %arg1: i32, %arg2: memref<8x32xf32, #tpu.memory_space<vmem>>, %arg3: memref<1x32x8xbf16, #tpu.memory_space<vmem>>, %arg4: memref<1x1x8xf32, #tpu.memory_space<vmem>>, %arg5: memref<1x32x8xbf16, #tpu.memory_space<vmem>>, %arg6: memref<1x1x8xf32, #tpu.memory_space<vmem>>, %arg7: memref<1x32x8xbf16, #tpu.memory_space<vmem>>, %arg8: memref<1x1x8xf32, #tpu.memory_space<vmem>>, %arg9: memref<1x8x32xbf16, #tpu.memory_space<vmem>>, %arg10: memref<1x32xf32, #tpu.memory_space<vmem>>, %arg11: memref<1x32xf32, #tpu.memory_space<vmem>>, %arg12: memref<1x32xf32, #tpu.memory_space<vmem>>, %arg13: memref<32x64xbf16, #tpu.memory_space<vmem>>, %arg14: memref<1x64xf32, #tpu.memory_space<vmem>>, %arg15: memref<64x32xbf16, #tpu.memory_space<vmem>>, %arg16: memref<1x32xf32, #tpu.memory_space<vmem>>, %arg17: memref<1x32xf32, #tpu.memory_space<vmem>>, %arg18: memref<1x32xf32, #tpu.memory_space<vmem>>, %arg19: memref<8x32xf32, #tpu.memory_space<vmem>>, %arg20: memref<1x1x8x8xf32, #tpu.memory_space<vmem>>, %arg21: memref<8x32xf32, #tpu.memory_space<vmem>>) attributes {dimension_semantics = [#tpu.dimension_semantics<parallel>, #tpu.dimension_semantics<arbitrary>], iteration_bounds = array<i64: 2, 4>, scalar_prefetch = 0 : i64, scratch_operands = 1 : i64, tpu.core_type = #tpu.core_type<tc>, window_params = [{transform_indices = @transform_0, window_bounds = array<i64: 8, 32>}, {transform_indices = @transform_1, window_bounds = array<i64: 1, 32, 8>}, {transform_indices = @transform_2, window_bounds = array<i64: 1, 1, 8>}, {transform_indices = @transform_3, window_bounds = array<i64: 1, 32, 8>}, {transform_indices = @transform_4, window_bounds = array<i64: 1, 1, 8>}, {transform_indices = @transform_5, window_bounds = array<i64: 1, 32, 8>}, {transform_indices = @transform_6, window_bounds = array<i64: 1, 1, 8>}, {transform_indices = @transform_7, window_bounds = array<i64: 1, 8, 32>}, {pipeline_mode = #tpu.pipeline_mode<synchronous>, transform_indices = @transform_8, window_bounds = array<i64: 1, 32>}, {pipeline_mode = #tpu.pipeline_mode<synchronous>, transform_indices = @transform_9, window_bounds = array<i64: 1, 32>}, {pipeline_mode = #tpu.pipeline_mode<synchronous>, transform_indices = @transform_10, window_bounds = array<i64: 1, 32>}, {pipeline_mode = #tpu.pipeline_mode<synchronous>, transform_indices = @transform_11, window_bounds = array<i64: 32, 64>}, {pipeline_mode = #tpu.pipeline_mode<synchronous>, transform_indices = @transform_12, window_bounds = array<i64: 1, 64>}, {pipeline_mode = #tpu.pipeline_mode<synchronous>, transform_indices = @transform_13, window_bounds = array<i64: 64, 32>}, {pipeline_mode = #tpu.pipeline_mode<synchronous>, transform_indices = @transform_14, window_bounds = array<i64: 1, 32>}, {pipeline_mode = #tpu.pipeline_mode<synchronous>, transform_indices = @transform_15, window_bounds = array<i64: 1, 32>}, {pipeline_mode = #tpu.pipeline_mode<synchronous>, transform_indices = @transform_16, window_bounds = array<i64: 1, 32>}, {transform_indices = @transform_17, window_bounds = array<i64: 8, 32>}, {transform_indices = @transform_18, window_bounds = array<i64: 1, 1, 8, 8>}]} {
    %c0_i32 = arith.constant 0 : i32
    %0 = arith.cmpi eq, %arg1, %c0_i32 : i32
    %1 = arith.extui %0 : i1 to i32
    %c0_i32_0 = arith.constant 0 : i32
    %2 = arith.cmpi ne, %1, %c0_i32_0 : i32
    scf.if %2 {
      %cst_39 = arith.constant 0.000000e+00 : f32
      %55 = vector.broadcast %cst_39 : f32 to vector<8x32xf32>
      %c0_40 = arith.constant 0 : index
      %c0_41 = arith.constant 0 : index
      %56 = vector.load %arg21[%c0_40, %c0_41] : memref<8x32xf32, #tpu.memory_space<vmem>>, vector<8x32xf32>
      tpu.vector_store %arg21[%c0_40, %c0_41], %55 {strides = array<i32>} : memref<8x32xf32, #tpu.memory_space<vmem>>, vector<8x32xf32>,
    } else {
    }
    %c0 = arith.constant 0 : index
    %c0_1 = arith.constant 0 : index
    %3 = vector.load %arg2[%c0, %c0_1] : memref<8x32xf32, #tpu.memory_space<vmem>>, vector<8x32xf32>
    %4 = arith.truncf %3 : vector<8x32xf32> to vector<8x32xbf16>
    %c0_2 = arith.constant 0 : index
    %c0_3 = arith.constant 0 : index
    %c0_4 = arith.constant 0 : index
    %5 = vector.load %arg3[%c0_2, %c0_3, %c0_4] : memref<1x32x8xbf16, #tpu.memory_space<vmem>>, vector<1x32x8xbf16>
    %6 = vector.shape_cast %5 : vector<1x32x8xbf16> to vector<32x8xbf16>
    %cst = arith.constant dense<0.000000e+00> : vector<8x8xf32>
    %7 = tpu.matmul %4, %6, %cst {dimension_numbers = #tpu.dot_dimension_numbers<[1], [0], [0], [1], [0, 0, 1, 1], [], []>} : vector<8x32xbf16>, vector<32x8xbf16>, vector<8x8xf32> -> vector<8x8xf32>
    %c0_5 = arith.constant 0 : index
    %c0_6 = arith.constant 0 : index
    %c0_7 = arith.constant 0 : index
    %8 = vector.load %arg4[%c0_5, %c0_6, %c0_7] : memref<1x1x8xf32, #tpu.memory_space<vmem>>, vector<1x1x8xf32>
    %9 = vector.shape_cast %8 : vector<1x1x8xf32> to vector<1x8xf32>
    %10 = vector.broadcast %9 : vector<1x8xf32> to vector<8x8xf32>
    %11 = arith.addf %7, %10 : vector<8x8xf32>
    %c0_8 = arith.constant 0 : index
    %c0_9 = arith.constant 0 : index
    %c0_10 = arith.constant 0 : index
    %12 = vector.load %arg5[%c0_8, %c0_9, %c0_10] : memref<1x32x8xbf16, #tpu.memory_space<vmem>>, vector<1x32x8xbf16>
    %13 = vector.shape_cast %12 : vector<1x32x8xbf16> to vector<32x8xbf16>
    %cst_11 = arith.constant dense<0.000000e+00> : vector<8x8xf32>
    %14 = tpu.matmul %4, %13, %cst_11 {dimension_numbers = #tpu.dot_dimension_numbers<[1], [0], [0], [1], [0, 0, 1, 1], [], []>} : vector<8x32xbf16>, vector<32x8xbf16>, vector<8x8xf32> -> vector<8x8xf32>
    %c0_12 = arith.constant 0 : index
    %c0_13 = arith.constant 0 : index
    %c0_14 = arith.constant 0 : index
    %15 = vector.load %arg6[%c0_12, %c0_13, %c0_14] : memref<1x1x8xf32, #tpu.memory_space<vmem>>, vector<1x1x8xf32>
    %16 = vector.shape_cast %15 : vector<1x1x8xf32> to vector<1x8xf32>
    %17 = vector.broadcast %16 : vector<1x8xf32> to vector<8x8xf32>
    %18 = arith.addf %14, %17 : vector<8x8xf32>
    %c0_15 = arith.constant 0 : index
    %c0_16 = arith.constant 0 : index
    %c0_17 = arith.constant 0 : index
    %19 = vector.load %arg7[%c0_15, %c0_16, %c0_17] : memref<1x32x8xbf16, #tpu.memory_space<vmem>>, vector<1x32x8xbf16>
    %20 = vector.shape_cast %19 : vector<1x32x8xbf16> to vector<32x8xbf16>
    %cst_18 = arith.constant dense<0.000000e+00> : vector<8x8xf32>
    %21 = tpu.matmul %4, %20, %cst_18 {dimension_numbers = #tpu.dot_dimension_numbers<[1], [0], [0], [1], [0, 0, 1, 1], [], []>} : vector<8x32xbf16>, vector<32x8xbf16>, vector<8x8xf32> -> vector<8x8xf32>
    %c0_19 = arith.constant 0 : index
    %c0_20 = arith.constant 0 : index
    %c0_21 = arith.constant 0 : index
    %22 = vector.load %arg8[%c0_19, %c0_20, %c0_21] : memref<1x1x8xf32, #tpu.memory_space<vmem>>, vector<1x1x8xf32>
    %23 = vector.shape_cast %22 : vector<1x1x8xf32> to vector<1x8xf32>
    %24 = vector.broadcast %23 : vector<1x8xf32> to vector<8x8xf32>
    %25 = arith.addf %21, %24 : vector<8x8xf32>
    %26 = arith.truncf %11 : vector<8x8xf32> to vector<8x8xbf16>
    %27 = arith.truncf %18 : vector<8x8xf32> to vector<8x8xbf16>
    %28 = arith.truncf %25 : vector<8x8xf32> to vector<8x8xbf16>
    %cst_22 = arith.constant dense<0.000000e+00> : vector<8x8xf32>
    %29 = tpu.matmul %26, %27, %cst_22 {dimension_numbers = #tpu.dot_dimension_numbers<[1], [1], [0], [0], [0, 0, 1, 0], [], []>} : vector<8x8xbf16>, vector<8x8xbf16>, vector<8x8xf32> -> vector<8x8xf32>
    %cst_23 = arith.constant dense<0xFF800000> : vector<8xf32>
    %30 = vector.multi_reduction <maximumf>, %29, %cst_23 [1] : vector<8x8xf32> to vector<8xf32>
    %31 = vector.shape_cast %30 : vector<8xf32> to vector<8x1xf32>
    %32 = vector.broadcast %31 : vector<8x1xf32> to vector<8x8xf32>
    %33 = arith.subf %29, %32 : vector<8x8xf32>
    %34 = math.exp %33 : vector<8x8xf32>
    %cst_24 = arith.constant dense<0.000000e+00> : vector<8xf32>
    %35 = vector.multi_reduction <add>, %34, %cst_24 [1] : vector<8x8xf32> to vector<8xf32>
    %36 = vector.shape_cast %35 : vector<8xf32> to vector<8x1xf32>
    %37 = tpu.reciprocal %36 {approx = true} : vector<8x1xf32> -> vector<8x1xf32>
    %38 = vector.broadcast %37 : vector<8x1xf32> to vector<8x8xf32>
    %39 = arith.mulf %34, %38 : vector<8x8xf32>
    %c0_25 = arith.constant 0 : index
    %c0_26 = arith.constant 0 : index
    %c0_27 = arith.constant 0 : index
    %c0_28 = arith.constant 0 : index
    %40 = vector.load %arg20[%c0_25, %c0_26, %c0_27, %c0_28] : memref<1x1x8x8xf32, #tpu.memory_space<vmem>>, vector<1x1x8x8xf32>
    %41 = vector.shape_cast %40 : vector<1x1x8x8xf32> to vector<8x8xf32>
    %42 = vector.shape_cast %39 : vector<8x8xf32> to vector<1x1x8x8xf32>
    tpu.vector_store %arg20[%c0_25, %c0_26, %c0_27, %c0_28], %42 {strides = array<i32>} : memref<1x1x8x8xf32, #tpu.memory_space<vmem>>, vector<1x1x8x8xf32>,
    %43 = arith.truncf %39 : vector<8x8xf32> to vector<8x8xbf16>
    %cst_29 = arith.constant dense<0.000000e+00> : vector<8x8xf32>
    %44 = tpu.matmul %43, %28, %cst_29 {dimension_numbers = #tpu.dot_dimension_numbers<[1], [0], [0], [1], [0, 0, 1, 1], [], []>} : vector<8x8xbf16>, vector<8x8xbf16>, vector<8x8xf32> -> vector<8x8xf32>
    %45 = arith.truncf %44 : vector<8x8xf32> to vector<8x8xbf16>
    %c0_30 = arith.constant 0 : index
    %c0_31 = arith.constant 0 : index
    %c0_32 = arith.constant 0 : index
    %46 = vector.load %arg9[%c0_30, %c0_31, %c0_32] : memref<1x8x32xbf16, #tpu.memory_space<vmem>>, vector<1x8x32xbf16>
    %47 = vector.shape_cast %46 : vector<1x8x32xbf16> to vector<8x32xbf16>
    %cst_33 = arith.constant dense<0.000000e+00> : vector<8x32xf32>
    %48 = tpu.matmul %45, %47, %cst_33 {dimension_numbers = #tpu.dot_dimension_numbers<[1], [0], [0], [1], [0, 0, 1, 1], [], []>} : vector<8x8xbf16>, vector<8x32xbf16>, vector<8x32xf32> -> vector<8x32xf32>
    %c0_34 = arith.constant 0 : index
    %c0_35 = arith.constant 0 : index
    %49 = vector.load %arg21[%c0_34, %c0_35] : memref<8x32xf32, #tpu.memory_space<vmem>>, vector<8x32xf32>
    %50 = arith.addf %49, %48 : vector<8x32xf32>
    %c0_36 = arith.constant 0 : index
    %c0_37 = arith.constant 0 : index
    %51 = vector.load %arg21[%c0_36, %c0_37] : memref<8x32xf32, #tpu.memory_space<vmem>>, vector<8x32xf32>
    tpu.vector_store %arg21[%c0_36, %c0_37], %50 {strides = array<i32>} : memref<8x32xf32, #tpu.memory_space<vmem>>, vector<8x32xf32>,
    %c3_i32 = arith.constant 3 : i32
    %52 = arith.cmpi eq, %arg1, %c3_i32 : i32
    %53 = arith.extui %52 : i1 to i32
    %c0_i32_38 = arith.constant 0 : i32
    %54 = arith.cmpi ne, %53, %c0_i32_38 : i32
    scf.if %54 {
      %c0_39 = arith.constant 0 : index
      %c0_40 = arith.constant 0 : index
      %55 = vector.load %arg21[%c0_39, %c0_40] : memref<8x32xf32, #tpu.memory_space<vmem>>, vector<8x32xf32>
      %c0_41 = arith.constant 0 : index
      %c0_42 = arith.constant 0 : index
      %56 = vector.load %arg10[%c0_41, %c0_42] : memref<1x32xf32, #tpu.memory_space<vmem>>, vector<1x32xf32>
      %57 = vector.broadcast %56 : vector<1x32xf32> to vector<8x32xf32>
      %58 = arith.addf %55, %57 : vector<8x32xf32>
      %c0_43 = arith.constant 0 : index
      %c0_44 = arith.constant 0 : index
      %59 = vector.load %arg2[%c0_43, %c0_44] : memref<8x32xf32, #tpu.memory_space<vmem>>, vector<8x32xf32>
      %60 = arith.addf %59, %58 : vector<8x32xf32>
      %c0_45 = arith.constant 0 : index
      %c0_46 = arith.constant 0 : index
      %61 = vector.load %arg11[%c0_45, %c0_46] : memref<1x32xf32, #tpu.memory_space<vmem>>, vector<1x32xf32>
      %c0_47 = arith.constant 0 : index
      %c0_48 = arith.constant 0 : index
      %62 = vector.load %arg12[%c0_47, %c0_48] : memref<1x32xf32, #tpu.memory_space<vmem>>, vector<1x32xf32>
      %cst_49 = arith.constant dense<0.000000e+00> : vector<8xf32>
      %63 = vector.multi_reduction <add>, %60, %cst_49 [1] : vector<8x32xf32> to vector<8xf32>
      %64 = vector.shape_cast %63 : vector<8xf32> to vector<8x1xf32>
      %cst_50 = arith.constant 3.200000e+01 : f32
      %65 = vector.broadcast %cst_50 : f32 to vector<8x1xf32>
      %66 = arith.divf %64, %65 : vector<8x1xf32>
      %67 = vector.broadcast %66 : vector<8x1xf32> to vector<8x32xf32>
      %68 = arith.subf %60, %67 : vector<8x32xf32>
      %69 = arith.mulf %68, %68 : vector<8x32xf32>
      %cst_51 = arith.constant dense<0.000000e+00> : vector<8xf32>
      %70 = vector.multi_reduction <add>, %69, %cst_51 [1] : vector<8x32xf32> to vector<8xf32>
      %71 = vector.shape_cast %70 : vector<8xf32> to vector<8x1xf32>
      %cst_52 = arith.constant 3.200000e+01 : f32
      %72 = vector.broadcast %cst_52 : f32 to vector<8x1xf32>
      %73 = arith.divf %71, %72 : vector<8x1xf32>
      %74 = vector.broadcast %66 : vector<8x1xf32> to vector<8x32xf32>
      %75 = arith.subf %60, %74 : vector<8x32xf32>
      %cst_53 = arith.constant 9.99999974E-6 : f32
      %76 = vector.broadcast %cst_53 : f32 to vector<8x1xf32>
      %77 = arith.addf %73, %76 : vector<8x1xf32>
      %78 = math.rsqrt %77 : vector<8x1xf32>
      %79 = vector.broadcast %78 : vector<8x1xf32> to vector<8x32xf32>
      %80 = arith.mulf %75, %79 : vector<8x32xf32>
      %81 = vector.broadcast %61 : vector<1x32xf32> to vector<8x32xf32>
      %82 = arith.mulf %80, %81 : vector<8x32xf32>
      %83 = vector.broadcast %62 : vector<1x32xf32> to vector<8x32xf32>
      %84 = arith.addf %82, %83 : vector<8x32xf32>
      %85 = arith.truncf %84 : vector<8x32xf32> to vector<8x32xbf16>
      %c0_54 = arith.constant 0 : index
      %c0_55 = arith.constant 0 : index
      %86 = vector.load %arg13[%c0_54, %c0_55] : memref<32x64xbf16, #tpu.memory_space<vmem>>, vector<32x64xbf16>
      %cst_56 = arith.constant dense<0.000000e+00> : vector<8x64xf32>
      %87 = tpu.matmul %85, %86, %cst_56 {dimension_numbers = #tpu.dot_dimension_numbers<[1], [0], [0], [1], [0, 0, 1, 1], [], []>} : vector<8x32xbf16>, vector<32x64xbf16>, vector<8x64xf32> -> vector<8x64xf32>
      %c0_57 = arith.constant 0 : index
      %c0_58 = arith.constant 0 : index
      %88 = vector.load %arg14[%c0_57, %c0_58] : memref<1x64xf32, #tpu.memory_space<vmem>>, vector<1x64xf32>
      %89 = vector.broadcast %88 : vector<1x64xf32> to vector<8x64xf32>
      %90 = arith.addf %87, %89 : vector<8x64xf32>
      %cst_59 = arith.constant 0.000000e+00 : f32
      %91 = vector.broadcast %cst_59 : f32 to vector<8x64xf32>
      %92 = arith.maximumf %90, %91 : vector<8x64xf32>
      %93 = arith.truncf %92 : vector<8x64xf32> to vector<8x64xbf16>
      %c0_60 = arith.constant 0 : index
      %c0_61 = arith.constant 0 : index
      %94 = vector.load %arg15[%c0_60, %c0_61] : memref<64x32xbf16, #tpu.memory_space<vmem>>, vector<64x32xbf16>
      %cst_62 = arith.constant dense<0.000000e+00> : vector<8x32xf32>
      %95 = tpu.matmul %93, %94, %cst_62 {dimension_numbers = #tpu.dot_dimension_numbers<[1], [0], [0], [1], [0, 0, 1, 1], [], []>} : vector<8x64xbf16>, vector<64x32xbf16>, vector<8x32xf32> -> vector<8x32xf32>
      %c0_63 = arith.constant 0 : index
      %c0_64 = arith.constant 0 : index
      %96 = vector.load %arg16[%c0_63, %c0_64] : memref<1x32xf32, #tpu.memory_space<vmem>>, vector<1x32xf32>
      %97 = vector.broadcast %96 : vector<1x32xf32> to vector<8x32xf32>
      %98 = arith.addf %95, %97 : vector<8x32xf32>
      %99 = arith.addf %84, %98 : vector<8x32xf32>
      %c0_65 = arith.constant 0 : index
      %c0_66 = arith.constant 0 : index
      %100 = vector.load %arg17[%c0_65, %c0_66] : memref<1x32xf32, #tpu.memory_space<vmem>>, vector<1x32xf32>
      %c0_67 = arith.constant 0 : index
      %c0_68 = arith.constant 0 : index
      %101 = vector.load %arg18[%c0_67, %c0_68] : memref<1x32xf32, #tpu.memory_space<vmem>>, vector<1x32xf32>
      %cst_69 = arith.constant dense<0.000000e+00> : vector<8xf32>
      %102 = vector.multi_reduction <add>, %99, %cst_69 [1] : vector<8x32xf32> to vector<8xf32>
      %103 = vector.shape_cast %102 : vector<8xf32> to vector<8x1xf32>
      %cst_70 = arith.constant 3.200000e+01 : f32
      %104 = vector.broadcast %cst_70 : f32 to vector<8x1xf32>
      %105 = arith.divf %103, %104 : vector<8x1xf32>
      %106 = vector.broadcast %105 : vector<8x1xf32> to vector<8x32xf32>
      %107 = arith.subf %99, %106 : vector<8x32xf32>
      %108 = arith.mulf %107, %107 : vector<8x32xf32>
      %cst_71 = arith.constant dense<0.000000e+00> : vector<8xf32>
      %109 = vector.multi_reduction <add>, %108, %cst_71 [1] : vector<8x32xf32> to vector<8xf32>
      %110 = vector.shape_cast %109 : vector<8xf32> to vector<8x1xf32>
      %cst_72 = arith.constant 3.200000e+01 : f32
      %111 = vector.broadcast %cst_72 : f32 to vector<8x1xf32>
      %112 = arith.divf %110, %111 : vector<8x1xf32>
      %113 = vector.broadcast %105 : vector<8x1xf32> to vector<8x32xf32>
      %114 = arith.subf %99, %113 : vector<8x32xf32>
      %cst_73 = arith.constant 9.99999974E-6 : f32
      %115 = vector.broadcast %cst_73 : f32 to vector<8x1xf32>
      %116 = arith.addf %112, %115 : vector<8x1xf32>
      %117 = math.rsqrt %116 : vector<8x1xf32>
      %118 = vector.broadcast %117 : vector<8x1xf32> to vector<8x32xf32>
      %119 = arith.mulf %114, %118 : vector<8x32xf32>
      %120 = vector.broadcast %100 : vector<1x32xf32> to vector<8x32xf32>
      %121 = arith.mulf %119, %120 : vector<8x32xf32>
      %122 = vector.broadcast %101 : vector<1x32xf32> to vector<8x32xf32>
      %123 = arith.addf %121, %122 : vector<8x32xf32>
      %c0_74 = arith.constant 0 : index
      %c0_75 = arith.constant 0 : index
      %124 = vector.load %arg19[%c0_74, %c0_75] : memref<8x32xf32, #tpu.memory_space<vmem>>, vector<8x32xf32>
      tpu.vector_store %arg19[%c0_74, %c0_75], %123 {strides = array<i32>} : memref<8x32xf32, #tpu.memory_space<vmem>>, vector<8x32xf32>,
    } else {
    }
    return
  }
  func.func @transform_0(%arg0: i32, %arg1: i32) -> (i32, i32) {
    %c0_i32 = arith.constant 0 : i32
    %c0_i32_0 = arith.constant 0 : i32
    return %arg0, %c0_i32 : i32, i32
  }
  func.func @transform_1(%arg0: i32, %arg1: i32) -> (i32, i32, i32) {
    %c0_i32 = arith.constant 0 : i32
    %c0_i32_0 = arith.constant 0 : i32
    %c0_i32_1 = arith.constant 0 : i32
    return %arg1, %c0_i32, %c0_i32_0 : i32, i32, i32
  }
  func.func @transform_2(%arg0: i32, %arg1: i32) -> (i32, i32, i32) {
    %c0_i32 = arith.constant 0 : i32
    %c0_i32_0 = arith.constant 0 : i32
    %c0_i32_1 = arith.constant 0 : i32
    return %arg1, %c0_i32, %c0_i32_0 : i32, i32, i32
  }
  func.func @transform_3(%arg0: i32, %arg1: i32) -> (i32, i32, i32) {
    %c0_i32 = arith.constant 0 : i32
    %c0_i32_0 = arith.constant 0 : i32
    %c0_i32_1 = arith.constant 0 : i32
    return %arg1, %c0_i32, %c0_i32_0 : i32, i32, i32
  }
  func.func @transform_4(%arg0: i32, %arg1: i32) -> (i32, i32, i32) {
    %c0_i32 = arith.constant 0 : i32
    %c0_i32_0 = arith.constant 0 : i32
    %c0_i32_1 = arith.constant 0 : i32
    return %arg1, %c0_i32, %c0_i32_0 : i32, i32, i32
  }
  func.func @transform_5(%arg0: i32, %arg1: i32) -> (i32, i32, i32) {
    %c0_i32 = arith.constant 0 : i32
    %c0_i32_0 = arith.constant 0 : i32
    %c0_i32_1 = arith.constant 0 : i32
    return %arg1, %c0_i32, %c0_i32_0 : i32, i32, i32
  }
  func.func @transform_6(%arg0: i32, %arg1: i32) -> (i32, i32, i32) {
    %c0_i32 = arith.constant 0 : i32
    %c0_i32_0 = arith.constant 0 : i32
    %c0_i32_1 = arith.constant 0 : i32
    return %arg1, %c0_i32, %c0_i32_0 : i32, i32, i32
  }
  func.func @transform_7(%arg0: i32, %arg1: i32) -> (i32, i32, i32) {
    %c0_i32 = arith.constant 0 : i32
    %c0_i32_0 = arith.constant 0 : i32
    %c0_i32_1 = arith.constant 0 : i32
    return %arg1, %c0_i32, %c0_i32_0 : i32, i32, i32
  }
  func.func @transform_8(%arg0: i32, %arg1: i32) -> (i32, i32) {
    %c0_i32 = arith.constant 0 : i32
    %c0_i32_0 = arith.constant 0 : i32
    %c0_i32_1 = arith.constant 0 : i32
    return %c0_i32, %c0_i32_0 : i32, i32
  }
  func.func @transform_9(%arg0: i32, %arg1: i32) -> (i32, i32) {
    %c0_i32 = arith.constant 0 : i32
    %c0_i32_0 = arith.constant 0 : i32
    %c0_i32_1 = arith.constant 0 : i32
    return %c0_i32, %c0_i32_0 : i32, i32
  }
  func.func @transform_10(%arg0: i32, %arg1: i32) -> (i32, i32) {
    %c0_i32 = arith.constant 0 : i32
    %c0_i32_0 = arith.constant 0 : i32
    %c0_i32_1 = arith.constant 0 : i32
    return %c0_i32, %c0_i32_0 : i32, i32
  }
  func.func @transform_11(%arg0: i32, %arg1: i32) -> (i32, i32) {
    %c0_i32 = arith.constant 0 : i32
    %c0_i32_0 = arith.constant 0 : i32
    %c0_i32_1 = arith.constant 0 : i32
    return %c0_i32, %c0_i32_0 : i32, i32
  }
  func.func @transform_12(%arg0: i32, %arg1: i32) -> (i32, i32) {
    %c0_i32 = arith.constant 0 : i32
    %c0_i32_0 = arith.constant 0 : i32
    %c0_i32_1 = arith.constant 0 : i32
    return %c0_i32, %c0_i32_0 : i32, i32
  }
  func.func @transform_13(%arg0: i32, %arg1: i32) -> (i32, i32) {
    %c0_i32 = arith.constant 0 : i32
    %c0_i32_0 = arith.constant 0 : i32
    %c0_i32_1 = arith.constant 0 : i32
    return %c0_i32, %c0_i32_0 : i32, i32
  }
  func.func @transform_14(%arg0: i32, %arg1: i32) -> (i32, i32) {
    %c0_i32 = arith.constant 0 : i32
    %c0_i32_0 = arith.constant 0 : i32
    %c0_i32_1 = arith.constant 0 : i32
    return %c0_i32, %c0_i32_0 : i32, i32
  }
  func.func @transform_15(%arg0: i32, %arg1: i32) -> (i32, i32) {
    %c0_i32 = arith.constant 0 : i32
    %c0_i32_0 = arith.constant 0 : i32
    %c0_i32_1 = arith.constant 0 : i32
    return %c0_i32, %c0_i32_0 : i32, i32
  }
  func.func @transform_16(%arg0: i32, %arg1: i32) -> (i32, i32) {
    %c0_i32 = arith.constant 0 : i32
    %c0_i32_0 = arith.constant 0 : i32
    %c0_i32_1 = arith.constant 0 : i32
    return %c0_i32, %c0_i32_0 : i32, i32
  }
  func.func @transform_17(%arg0: i32, %arg1: i32) -> (i32, i32) {
    %c0_i32 = arith.constant 0 : i32
    %c0_i32_0 = arith.constant 0 : i32
    return %arg0, %c0_i32 : i32, i32
  }
  func.func @transform_18(%arg0: i32, %arg1: i32) -> (i32, i32, i32, i32) {
    %c0_i32 = arith.constant 0 : i32
    %c0_i32_0 = arith.constant 0 : i32
    %c0_i32_1 = arith.constant 0 : i32
    return %arg0, %arg1, %c0_i32, %c0_i32_0 : i32, i32, i32, i32
  }
}

</mosaic_0001>

<bundles_post_ra>
// kernel: tpu_custom_call.1
= control target key start
LH: loop header
LB: loop body
LE: loop exit
PB: predicated region body
PF: predicated region fallthrough
CT: control target
= control target key end

     0   :  { %s4128_s0 = inlined_call_operand.hbm [shape: f32[16,32], index: 0, kind: input, shape index: {}]   ;;  %s4129_s1 = inlined_call_operand.hbm [shape: bf16[4,32,8], index: 1, kind: input, shape index: {}]   ;;  %s4130_s2 = inlined_call_operand.hbm [shape: f32[4,1,8], index: 2, kind: input, shape index: {}]   ;;  %s4131_s3 = inlined_call_operand.hbm [shape: bf16[4,32,8], index: 3, kind: input, shape index: {}]   ;;  %s4132_s4 = inlined_call_operand.hbm [shape: f32[4,1,8], index: 4, kind: input, shape index: {}]   ;;  %s4133_s5 = inlined_call_operand.hbm [shape: bf16[4,32,8], index: 5, kind: input, shape index: {}]   ;;  %s4134_s6 = inlined_call_operand.hbm [shape: f32[4,1,8], index: 6, kind: input, shape index: {}]   ;;  %s4135_s7 = inlined_call_operand.hbm [shape: bf16[4,8,32], index: 7, kind: input, shape index: {}]   ;;  %s4136_s8 = inlined_call_operand.hbm [shape: f32[1,32], index: 8, kind: input, shape index: {}]   ;;  %s4137_s9 = inlined_call_operand.hbm [shape: f32[1,32], index: 9, kind: input, shape index: {}]   ;;  %s4138_s10 = inlined_call_operand.hbm [shape: f32[1,32], index: 10, kind: input, shape index: {}]   ;;  %s4139_s11 = inlined_call_operand.hbm [shape: bf16[32,64], index: 11, kind: input, shape index: {}]   ;;  %s4140_s12 = inlined_call_operand.hbm [shape: f32[1,64], index: 12, kind: input, shape index: {}]   ;;  %s4141_s13 = inlined_call_operand.hbm [shape: bf16[64,32], index: 13, kind: input, shape index: {}]   ;;  %s4142_s14 = inlined_call_operand.hbm [shape: f32[1,32], index: 14, kind: input, shape index: {}]   ;;  %s4143_s15 = inlined_call_operand.hbm [shape: f32[1,32], index: 15, kind: input, shape index: {}]   ;;  %s4144_s16 = inlined_call_operand.hbm [shape: f32[1,32], index: 16, kind: input, shape index: {}]   ;;  %s4145_s17 = inlined_call_operand.hbm [shape: f32[16,32], index: 17, kind: output, shape index: {0}]   ;;  %s4146_s18 = inlined_call_operand.hbm [shape: f32[2,4,8,8], index: 18, kind: output, shape index: {1}]  }
   0x1   :  { %4196 = sst [smem:[#allocation59_spill]] %s4128_s0 }
   0x2   :  { %4197 = sst [smem:[#allocation60_spill]] %s4129_s1 }
   0x3   :  { %4198 = sst [smem:[#allocation61_spill]] %s4130_s2 }
   0x4   :  { %4199 = sst [smem:[#allocation62_spill]] %s4131_s3 }
   0x5   :  { %4200 = sst [smem:[#allocation63_spill]] %s4132_s4 }
   0x6   :  { %4201 = sst [smem:[#allocation64_spill]] %s4133_s5 }
   0x7   :  { %4202 = sst [smem:[#allocation65_spill]] %s4134_s6 }
   0x8   :  { %4203 = sst [smem:[#allocation66_spill]] %s4135_s7 }
   0x9   :  { %4204 = sst [smem:[#allocation67_spill]] %s4136_s8 }
   0xa   :  { %4205 = sst [smem:[#allocation68_spill]] %s4137_s9 }
   0xb   :  { %4206 = sst [smem:[#allocation69_spill]] %s4138_s10 }
   0xc   :  { %4207 = sst [smem:[#allocation70_spill]] %s4139_s11 }
   0xd   :  { %4208 = sst [smem:[#allocation71_spill]] %s4140_s12 }
   0xe   :  { %4209 = sst [smem:[#allocation72_spill]] %s4141_s13 }
   0xf   :  { %4210 = sst [smem:[#allocation73_spill]] %s4142_s14 }
  0x10   :  { %4211 = sst [smem:[#allocation74_spill]] %s4143_s15 }
  0x11   :  { %4212 = sst [smem:[#allocation75_spill]] %s4144_s16 }
  0x12   :  { %4213 = sst [smem:[#allocation76_spill]] %s4145_s17 }
  0x13   :  { %4214 = sst [smem:[#allocation77_spill]] %s4146_s18 }
  0x14   :  { %24 = vsyncpa [#allocation4], 0 }
  0x15   :  { %26 = vsyncpa [#allocation4 + $0x1], 0 }
  0x16   :  { %27 = vsyncpa [#allocation7], 0 }
  0x17   :  { %29 = vsyncpa [#allocation7 + $0x1], 0 }
  0x18   :  { %30 = vsyncpa [#allocation10], 0 }
  0x19   :  { %32 = vsyncpa [#allocation10 + $0x1], 0 }
  0x1a   :  { %33 = vsyncpa [#allocation13], 0 }
  0x1b   :  { %35 = vsyncpa [#allocation13 + $0x1], 0 }
  0x1c   :  { %36 = vsyncpa [#allocation16], 0 }
  0x1d   :  { %38 = vsyncpa [#allocation16 + $0x1], 0 }
  0x1e   :  { %39 = vsyncpa [#allocation19], 0 }
  0x1f   :  { %40 = vsyncpa [#allocation22], 0 }
  0x20   :  { %41 = vsyncpa [#allocation25], 0 }
  0x21   :  { %42 = vsyncpa [#allocation28], 0 }
  0x22   :  { %43 = vsyncpa [#allocation5], 0 }
  0x23   :  { %45 = vsyncpa [#allocation5 + $0x1], 0 }
  0x24   :  { %46 = vsyncpa [#allocation32], 0 }
  0x25   :  { %48 = vsyncpa [#allocation32 + $0x1], 0  ;;  %s3236_s27 = smov 0   ;;  %s3238_s28 = smov 0  }
  0x26   :  { %s3240_s29 = smov 0   ;;  %s3242_s30 = smov 0  }
  0x27   :  { %s3244_s0 = smov 0   ;;  %s3246_s19 = smov 0  }
  0x28   :  { %s3248_s1 = smov 0   ;;  %s3250_s20 = smov 0  }
  0x29   :  { %s3252_s21 = smov 0   ;;  %s3254_s22 = smov 0  }
  0x2a   :  { %s3256_s2 = smov 0   ;;  %s3258_s23 = smov 0  }
  0x2b   :  { %s3260_s24 = smov 0   ;;  %s3262_s25 = smov 0  }
  0x2c LB: > { %4215 = sst [smem:[#allocation45_spill]] %s3061_s27  ;;  %s3307_s26 = sadd.s32 4294967295, %s3113_s25   ;;  %s3113_s25 = sphi %s3262_s25, %s54_s25   ;;  %s3109_s24 = sphi %s3260_s24, %s4326_s24   ;;  %s3105_s23 = sphi %s3258_s23, %s4332_s23   ;;  %s3101_s2 = sphi %s3256_s2, %s4324_s2   ;;  %s3097_s22 = sphi %s3254_s22, %s4331_s22   ;;  %s3093_s21 = sphi %s3252_s21, %s4323_s21   ;;  %s3089_s20 = sphi %s3250_s20, %s4322_s20   ;;  %s3085_s1 = sphi %s3248_s1, %s4321_s1   ;;  %s3081_s19 = sphi %s3246_s19, %s4330_s19   ;;  %s3077_s0 = sphi %s3244_s0, %s4329_s0   ;;  %s3073_s30 = sphi %s3242_s30, %s4328_s30   ;;  %s3069_s29 = sphi %s3240_s29, %s4327_s29   ;;  %s3065_s28 = sphi %s3238_s28, %s4319_s28   ;;  %s3061_s27 = sphi %s3236_s27, %s4318_s27  }
  0x2d   : > { %4216 = sst [smem:[#allocation46_spill]] %s3065_s28  ;;  %p1952_p0 = scmp.ge.s32.totalorder %s3113_s25, 1 }
  0x2e   : > { %4217 = sst [smem:[#allocation47_spill]] %s3069_s29  ;;  %p4162_p1 = scmp.eq.s32.totalorder %s3307_s26, 0 }
  0x2f   : > { %4218 = sst [smem:[#allocation48_spill]] %s3085_s1  ;;  %p522_p2 = scmp.lt.s32.totalorder %s3113_s25, 9 }
  0x30   : > { %4219 = sst [smem:[#allocation49_spill]] %s3089_s20  ;;  %s3115_s17 = smov [#allocation17]  }
  0x31   : > { %4220 = sst [smem:[#allocation50_spill]] %s3093_s21  ;;  %p3312_p3 = pnand %p1952_p0, %p522_p2 }
  0x32   : > { %4221 = sst [smem:[#allocation51_spill]] %s3097_s22  ;;  %s3116_s22 = smov [#allocation18]  }
  0x33   : > { %4222 = sst [smem:[#allocation52_spill]] %s3101_s2  ;;  %s535_s2 = sshll.u32 %s3115_s17, 4  ;;  %s536_s2 = int_to_ptr.vmem [resolvable:$true] %s535_s2 }
  0x34   : > { %4223 = sst [smem:[#allocation53_spill]] %s3109_s24  ;;  %p2179_p4 = pneg %p3312_p3 }
  0x35   : > { %s4224_s18 = scalar_select %p3312_p3, 1, 0 }
  0x36   : > { %s546_s7 = sshll.u32 %s3116_s22, 4  ;;  %p3320_p5 = pnand %p2179_p4, %p4162_p1  ;;  %s3324_s7 = int_to_ptr.vmem [resolvable:$true] %s546_s7 }
  0x37   : > { %4225 = sst [smem:[#allocation54_spill]] %s4224_s18  ;;  %s3117_s4 = smov [#allocation21]  }
  0x38   : > { %s4226_s6 = scalar_select %p3320_p5, 1, 0 }
  0x39   : > { %s567_s27 = sshll.u32 %s3117_s4, 4  ;;  %s4227_s8 = sld [smem:[#allocation67_spill]]  ;;  %s3326_s27 = int_to_ptr.vmem [resolvable:$true] %s567_s27 }
  0x3a   : > { %p3336_p7 = pneg %p3320_p5 }
  0x3c   : > { %s4228_s22 = scalar_select %p3336_p7, 1, 0 }
  0x3f   : > { %s2407_s17 = scalar_lea.hbm %s4227_s8, 16 }
  0x40   : > { %p2408_p6 = scmp.ne.s32.totalorder %s4227_s8, %s2407_s17  ;;  %p2414_p10 = scmp.lt.u32.totalorder %s2407_s17, %s4227_s8 }
  0x42   : > { %p2410_p8 = pnand %p3336_p7, %p2408_p6 }
  0x44   : > { %p2411_p9 = pneg %p2410_p8 }
  0x46   : > { %p2416_p11 = pnand %p2414_p10, %p2411_p9 }
  0x48   : > { %2419 = shalt.err (!%p2416_p11)
}
  0x49   : > { %s2420_s28 = scalar_lea.vmem %s536_s2, 16  ;;  %s2427_s18 = scalar_lea.vmem %s536_s2, 32 }
  0x4a   : > { %p2421_p12 = scmp.ne.s32.totalorder %s536_s2, %s2420_s28  ;;  %p2428_p2 = scmp.lt.s32.totalorder %s536_s2, %s536_s2 }
  0x4b   : > { %p2429_p4 = scmp.lt.s32.totalorder %s2427_s18, %s2420_s28 }
  0x4c   : > { %p2423_p13 = pnand %p2421_p12, %p3336_p7 }
  0x4d   : > { %p2430_p1 = por %p2429_p4, %p2428_p2 }
  0x4e   : > { %p2424_p0 = pneg %p2423_p13 }
  0x50   : > { %p2431_p3 = pnand %p2430_p1, %p2424_p0 }
  0x52   : > { %2434 = shalt.err (!%p2431_p3)
}
  0x53   : > { %2182 = dma.hbm_to_vmem [thread:$0]  (!%p3320_p5), %s4227_s8, 16, %s536_s2, [#allocation16]  }
  0x54   : > { %s4229_s9 = sld [smem:[#allocation68_spill]] }
  0x5a   : > { %s2435_s4 = scalar_lea.hbm %s4229_s9, 16 }
  0x5b   : > { %p2436_p6 = scmp.ne.s32.totalorder %s4229_s9, %s2435_s4  ;;  %p2442_p1 = scmp.lt.u32.totalorder %s2435_s4, %s4229_s9 }
  0x5d   : > { %p2438_p8 = pnand %p2436_p6, %p3336_p7 }
  0x5f   : > { %p2439_p9 = pneg %p2438_p8 }
  0x61   : > { %p2444_p3 = pnand %p2442_p1, %p2439_p9 }
  0x63   : > { %2447 = shalt.err (!%p2444_p3)
}
  0x64   : > { %s2448_s2 = scalar_lea.vmem %s3324_s7, 16  ;;  %s2455_s21 = scalar_lea.vmem %s3324_s7, 32 }
  0x65   : > { %p2449_p10 = scmp.ne.s32.totalorder %s3324_s7, %s2448_s2  ;;  %p2456_p13 = scmp.lt.s32.totalorder %s3324_s7, %s3324_s7 }
  0x66   : > { %p2457_p0 = scmp.lt.s32.totalorder %s2455_s21, %s2448_s2 }
  0x67   : > { %p2451_p11 = pnand %p2449_p10, %p3336_p7 }
  0x68   : > { %p2458_p2 = por %p2457_p0, %p2456_p13 }
  0x69   : > { %p2452_p12 = pneg %p2451_p11 }
  0x6b   : > { %p2459_p4 = pnand %p2458_p2, %p2452_p12 }
  0x6d   : > { %2462 = shalt.err (!%p2459_p4)
}
  0x6e   : > { %2185 = dma.hbm_to_vmem [thread:$0]  (!%p3320_p5), %s4229_s9, 16, %s3324_s7, [#allocation19]  }
  0x6f   : > { %s4230_s11 = sld [smem:[#allocation70_spill]] }
  0x75   : > { %s2463_s17 = scalar_lea.hbm %s4230_s11, 256 }
  0x76   : > { %p2464_p6 = scmp.ne.s32.totalorder %s4230_s11, %s2463_s17  ;;  %p2470_p1 = scmp.lt.u32.totalorder %s2463_s17, %s4230_s11 }
  0x78   : > { %p2466_p8 = pnand %p2464_p6, %p3336_p7 }
  0x7a   : > { %p2467_p9 = pneg %p2466_p8 }
  0x7c   : > { %p2472_p3 = pnand %p2470_p1, %p2467_p9 }
  0x7e   : > { %2475 = shalt.err (!%p2472_p3)
}
  0x7f   : > { %s2476_s7 = scalar_lea.vmem %s3326_s27, 256  ;;  %p2484_p13 = scmp.lt.s32.totalorder %s3326_s27, %s3326_s27 }
  0x80   : > { %p2477_p10 = scmp.ne.s32.totalorder %s3326_s27, %s2476_s7  ;;  %p2485_p0 = scmp.lt.s32.totalorder %s2476_s7, %s2476_s7 }
  0x82   : > { %p2479_p11 = pnand %p2477_p10, %p3336_p7  ;;  %p2486_p2 = por %p2485_p0, %p2484_p13 }
  0x84   : > { %p2480_p12 = pneg %p2479_p11 }
  0x86   : > { %p2487_p4 = pnand %p2486_p2, %p2480_p12 }
  0x88   : > { %2490 = shalt.err (!%p2487_p4)
}
  0x89   : > { %s4168_s21 = smov 64   ;;  %s4170_s24 = smov 4  }
  0x8a   : > { %2191 = dma.hbm_to_vmem [thread:$0]  (!%p3320_p5), %s4230_s11, 256, %s3326_s27, [#allocation22], %s4168_s21, %s4168_s21, %s4170_s24  }
  0x8b   : > { %s3120_s20 = smov [#allocation24]   ;;  %s3121_s4 = smov [#allocation27]  }
  0x8c   : > { %s591_s17 = sshll.u32 %s3120_s20, 4  ;;  %s616_s28 = sshll.u32 %s3121_s4, 4  ;;  %s592_s17 = int_to_ptr.vmem [resolvable:$true] %s591_s17  ;;  %s617_s28 = int_to_ptr.vmem [resolvable:$true] %s616_s28 }
  0x8d   : > { %s4231_s13 = sld [smem:[#allocation72_spill]] }
  0x93   : > { %s2491_s7 = scalar_lea.hbm %s4231_s13, 512 }
  0x94   : > { %p2492_p6 = scmp.ne.s32.totalorder %s4231_s13, %s2491_s7  ;;  %p2498_p1 = scmp.lt.u32.totalorder %s2491_s7, %s4231_s13 }
  0x96   : > { %p2494_p8 = pnand %p2492_p6, %p3336_p7 }
  0x98   : > { %p2495_p9 = pneg %p2494_p8 }
  0x9a   : > { %p2500_p3 = pnand %p2498_p1, %p2495_p9 }
  0x9c   : > { %2503 = shalt.err (!%p2500_p3)
}
  0x9d   : > { %s2504_s27 = scalar_lea.vmem %s592_s17, 512  ;;  %p2512_p13 = scmp.lt.s32.totalorder %s592_s17, %s592_s17 }
  0x9e   : > { %p2505_p10 = scmp.ne.s32.totalorder %s592_s17, %s2504_s27  ;;  %p2513_p0 = scmp.lt.s32.totalorder %s2504_s27, %s2504_s27 }
  0xa0   : > { %p2507_p11 = pnand %p2505_p10, %p3336_p7  ;;  %p2514_p2 = por %p2513_p0, %p2512_p13 }
  0xa2   : > { %p2508_p12 = pneg %p2507_p11 }
  0xa4   : > { %p2515_p4 = pnand %p2514_p2, %p2508_p12 }
  0xa6   : > { %2518 = shalt.err (!%p2515_p4)
}
  0xa7   : > { %2197 = dma.hbm_to_vmem [thread:$0]  (!%p3320_p5), %s4231_s13, 512, %s592_s17, [#allocation25], %s4168_s21, %s4168_s21, %s4170_s24  }
  0xa8   : > { %s4232_s15 = sld [smem:[#allocation74_spill]] }
  0xae   : > { %s2519_s29 = scalar_lea.hbm %s4232_s15, 16 }
  0xaf   : > { %p2520_p6 = scmp.ne.s32.totalorder %s4232_s15, %s2519_s29  ;;  %p2526_p1 = scmp.lt.u32.totalorder %s2519_s29, %s4232_s15 }
  0xb1   : > { %p2522_p8 = pnand %p2520_p6, %p3336_p7 }
  0xb3   : > { %p2523_p9 = pneg %p2522_p8 }
  0xb5   : > { %p2528_p3 = pnand %p2526_p1, %p2523_p9 }
  0xb7   : > { %2531 = shalt.err (!%p2528_p3)
}
  0xb8   : > { %s2532_s2 = scalar_lea.vmem %s617_s28, 16  ;;  %s2539_s17 = scalar_lea.vmem %s617_s28, 32 }
  0xb9   : > { %p2533_p10 = scmp.ne.s32.totalorder %s617_s28, %s2532_s2  ;;  %p2540_p13 = scmp.lt.s32.totalorder %s617_s28, %s617_s28 }
  0xba   : > { %p2541_p0 = scmp.lt.s32.totalorder %s2539_s17, %s2532_s2 }
  0xbb   : > { %p2535_p11 = pnand %p2533_p10, %p3336_p7 }
  0xbc   : > { %p2542_p2 = por %p2541_p0, %p2540_p13 }
  0xbd   : > { %p2536_p12 = pneg %p2535_p11 }
  0xbf   : > { %p2543_p4 = pnand %p2542_p2, %p2536_p12 }
  0xc1   : > { %2546 = shalt.err (!%p2543_p4)
}
  0xc2   : > { %2203 = dma.hbm_to_vmem [thread:$0]  (!%p3320_p5), %s4232_s15, 16, %s617_s28, [#allocation28]  }
  0xc3   : > { %p4173_p6 = scmp.eq.s32.totalorder %s3113_s25, 0  ;;  %p106_p8 = scmp.ne.s32.totalorder %s3081_s19, %s3077_s0 }
  0xc4   : > { %p112_p9 = scmp.ne.s32.totalorder %s3077_s0, %s3073_s30  ;;  %p4172_p1 = scmp.lt.s32.totalorder %s3113_s25, 8 }
  0xc5   : > { %s3448_s8 = sand.u32 1, %s3113_s25   ;;  %p108_p3 = por %p106_p8, %p4173_p6 }
  0xc6   : > { %p4233_p10 = scmp.eq.s32.totalorder %s3307_s26, 0  ;;  %s3459_s14 = sand.u32 1, %s3081_s19  }
  0xc7   : > { %s3462_s16 = sshll.u32 %s3459_s14, 4  ;;  %s3465_s28 = sshll.u32 %s3105_s23, 8 }
  0xc8   : > { %p3454_p11 = por %p112_p9, %p4233_p10  ;;  %s4235_s1 = sld [smem:[#allocation60_spill]] }
  0xc9   : > { %s660_s18 = scalar_lea.vmem [#allocation6], %s3462_s16  ;;  %p3476_p12 = pnand %p4172_p1, %p108_p3 }
  0xca   : > { %s4234_s9 = scalar_select %p3454_p11, 1, 0 }
  0xcb   : > { %s667_s2 = sshll.u32 %s660_s18, 4  ;;  %p3487_p0 = pneg %p3476_p12  ;;  %s3480_s2 = int_to_ptr.vmem [resolvable:$true] %s667_s2 }
  0xcc   : > { %s4237_s17 = scalar_select %p3476_p12, 1, 0 }
  0xcd   : > { %s4238_s30 = scalar_select %p3487_p0, 1, 0 }
  0xce   : > { %s4236_s4 = smov %s4235_s1  ;;  %s3471_s20 = scalar_lea.hbm %s4235_s1, %s3465_s28 }
  0xcf   : > { %s2547_s27 = scalar_lea.hbm %s3471_s20, 256  ;;  %s2552_s18 = scalar_lea.hbm %s4236_s4, 1024 }
  0xd0   : > { %p2548_p13 = scmp.ne.s32.totalorder %s3471_s20, %s2547_s27  ;;  %p2553_p8 = scmp.lt.u32.totalorder %s3471_s20, %s4236_s4 }
  0xd1   : > { %p2554_p9 = scmp.lt.u32.totalorder %s2552_s18, %s2547_s27  ;;  %p2556_p10 = scmp.lt.u32.totalorder %s2547_s27, %s3471_s20 }
  0xd2   : > { %p2550_p2 = pnand %p3487_p0, %p2548_p13 }
  0xd3   : > { %p2555_p3 = por %p2554_p9, %p2553_p8 }
  0xd4   : > { %p2551_p4 = pneg %p2550_p2 }
  0xd5   : > { %p2557_p1 = por %p2556_p10, %p2555_p3 }
  0xd7   : > { %p2558_p6 = pnand %p2557_p1, %p2551_p4 }
  0xd9   : > { %2561 = shalt.err (!%p2558_p6)
}
  0xda   : > { %s2562_s7 = scalar_lea.vmem %s3480_s2, 256  ;;  %s3122_s29 = smov [#allocation6]  }
  0xdb   : > { %p2563_p13 = scmp.ne.s32.totalorder %s3480_s2, %s2562_s7  ;;  %s2567_s1 = sshll.u32 %s3122_s29, 4  ;;  %s2568_s1 = int_to_ptr.vmem [resolvable:$false] %s2567_s1 }
  0xdc   : > { %s2569_s21 = scalar_lea.vmem %s2568_s1, 512  ;;  %p2570_p5 = scmp.lt.s32.totalorder %s3480_s2, %s2568_s1 }
  0xdd   : > { %p2565_p2 = pnand %p2563_p13, %p3487_p0  ;;  %p2571_p7 = scmp.lt.s32.totalorder %s2569_s21, %s2562_s7 }
  0xdf   : > { %p2566_p11 = pneg %p2565_p2  ;;  %p2572_p8 = por %p2571_p7, %p2570_p5 }
  0xe1   : > { %p2573_p9 = pnand %p2572_p8, %p2566_p11 }
  0xe3   : > { %2576 = shalt.err (!%p2573_p9)
}
  0xe4   : > { %s4239_s24 = smov 4   ;;  %s4240_s27 = smov 64  }
  0xe5   : > { %s4241_s18 = scalar_lea.sflag [#allocation7], %s3448_s8  ;;  %s4242_s3 = sld [smem:[#allocation62_spill]] }
  0xe6   : > { %2213 = dma.hbm_to_vmem [thread:$0]  (!%p3476_p12), %s3471_s20, 256, %s3480_s2, %s4241_s18, %s4240_s27, %s4240_s27, %s4239_s24  }
  0xe7   : > { %s698_s21 = scalar_lea.vmem [#allocation9], %s3462_s16  ;;  %s4185_s11 = scalar_lea.sflag [#allocation10], %s3448_s8 }
  0xe8   : > { %s705_s4 = sshll.u32 %s698_s21, 4  ;;  %s3522_s4 = int_to_ptr.vmem [resolvable:$true] %s705_s4 }
  0xeb   : > { %s3519_s7 = scalar_lea.hbm %s4242_s3, %s3465_s28  ;;  %s2582_s18 = scalar_lea.hbm %s4242_s3, 1024 }
  0xec   : > { %s2577_s13 = scalar_lea.hbm %s3519_s7, 256  ;;  %p2583_p1 = scmp.lt.u32.totalorder %s3519_s7, %s4242_s3 }
  0xed   : > { %p2578_p5 = scmp.ne.s32.totalorder %s3519_s7, %s2577_s13  ;;  %p2584_p11 = scmp.lt.u32.totalorder %s2582_s18, %s2577_s13 }
  0xee   : > { %p2586_p3 = scmp.lt.u32.totalorder %s2577_s13, %s3519_s7 }
  0xef   : > { %p2580_p7 = pnand %p2578_p5, %p3487_p0  ;;  %p2585_p4 = por %p2584_p11, %p2583_p1 }
  0xf1   : > { %p2581_p6 = pneg %p2580_p7  ;;  %p2587_p10 = por %p2586_p3, %p2585_p4 }
  0xf3   : > { %p2588_p13 = pnand %p2587_p10, %p2581_p6 }
  0xf5   : > { %2591 = shalt.err (!%p2588_p13)
}
  0xf6   : > { %s2592_s21 = scalar_lea.vmem %s3522_s4, 256  ;;  %s3123_s20 = smov [#allocation9]  }
  0xf7   : > { %p2593_p2 = scmp.ne.s32.totalorder %s3522_s4, %s2592_s21  ;;  %s2597_s2 = sshll.u32 %s3123_s20, 4  ;;  %s2598_s2 = int_to_ptr.vmem [resolvable:$false] %s2597_s2 }
  0xf8   : > { %s2599_s29 = scalar_lea.vmem %s2598_s2, 512  ;;  %p2600_p5 = scmp.lt.s32.totalorder %s3522_s4, %s2598_s2 }
  0xf9   : > { %p2595_p8 = pnand %p2593_p2, %p3487_p0  ;;  %p2601_p7 = scmp.lt.s32.totalorder %s2599_s29, %s2592_s21 }
  0xfb   : > { %p2596_p9 = pneg %p2595_p8  ;;  %p2602_p1 = por %p2601_p7, %p2600_p5 }
  0xfd   : > { %p2603_p11 = pnand %p2602_p1, %p2596_p9 }
  0xff   : > { %2606 = shalt.err (!%p2603_p11)
}
 0x100   : > { %2219 = dma.hbm_to_vmem [thread:$0]  (!%p3476_p12), %s3519_s7, 256, %s3522_s4, %s4185_s11, %s4240_s27, %s4240_s27, %s4239_s24  }
 0x101   : > { %s4243_s5 = sld [smem:[#allocation64_spill]]  ;;  %s736_s21 = scalar_lea.vmem [#allocation12], %s3462_s16 }
 0x102   : > { %s743_s20 = sshll.u32 %s736_s21, 4  ;;  %s3124_s2 = smov [#allocation20]   ;;  %s3558_s20 = int_to_ptr.vmem [resolvable:$true] %s743_s20 }
 0x103   : > { %s3560_s29 = sshll.u32 %s3124_s2, 4  ;;  %s4184_s3 = scalar_lea.sflag [#allocation13], %s3448_s8  ;;  %s558_s29 = int_to_ptr.vmem [resolvable:$true] %s3560_s29 }
 0x107   : > { %s3555_s1 = scalar_lea.hbm %s4243_s5, %s3465_s28  ;;  %s2612_s7 = scalar_lea.hbm %s4243_s5, 1024 }
 0x108   : > { %s2607_s15 = scalar_lea.hbm %s3555_s1, 256  ;;  %p2613_p10 = scmp.lt.u32.totalorder %s3555_s1, %s4243_s5 }
 0x109   : > { %p2608_p6 = scmp.ne.s32.totalorder %s3555_s1, %s2607_s15  ;;  %p2614_p13 = scmp.lt.u32.totalorder %s2612_s7, %s2607_s15 }
 0x10a   : > { %p2616_p8 = scmp.lt.u32.totalorder %s2607_s15, %s3555_s1 }
 0x10b   : > { %p2610_p4 = pnand %p2608_p6, %p3487_p0  ;;  %p2615_p2 = por %p2614_p13, %p2613_p10 }
 0x10d   : > { %p2611_p3 = pneg %p2610_p4  ;;  %p2617_p9 = por %p2616_p8, %p2615_p2 }
 0x10f   : > { %p2618_p5 = pnand %p2617_p9, %p2611_p3 }
 0x111   : > { %2621 = shalt.err (!%p2618_p5)
}
 0x112   : > { %s2622_s16 = scalar_lea.vmem %s3558_s20, 256  ;;  %s3125_s21 = smov [#allocation12]  }
 0x113   : > { %p2623_p7 = scmp.ne.s32.totalorder %s3558_s20, %s2622_s16  ;;  %s2627_s2 = sshll.u32 %s3125_s21, 4  ;;  %s2628_s2 = int_to_ptr.vmem [resolvable:$false] %s2627_s2 }
 0x114   : > { %s2629_s4 = scalar_lea.vmem %s2628_s2, 512  ;;  %p2630_p6 = scmp.lt.s32.totalorder %s3558_s20, %s2628_s2 }
 0x115   : > { %p2625_p1 = pnand %p2623_p7, %p3487_p0  ;;  %p2631_p4 = scmp.lt.s32.totalorder %s2629_s4, %s2622_s16 }
 0x117   : > { %p2626_p11 = pneg %p2625_p1  ;;  %p2632_p10 = por %p2631_p4, %p2630_p6 }
 0x119   : > { %p2633_p13 = pnand %p2632_p10, %p2626_p11 }
 0x11b   : > { %2636 = shalt.err (!%p2633_p13)
}
 0x11c   : > { %2225 = dma.hbm_to_vmem [thread:$0]  (!%p3476_p12), %s3555_s1, 256, %s3558_s20, %s4184_s3, %s4240_s27, %s4240_s27, %s4239_s24  }
 0x11d   : > { %s4244_s10 = sld [smem:[#allocation69_spill]]  ;;  %p4245_p2 = scmp.ne.s32.totalorder %s4228_s22, 0 }
 0x123   : > { %s2637_s7 = scalar_lea.hbm %s4244_s10, 16 }
 0x124   : > { %p2638_p3 = scmp.ne.s32.totalorder %s4244_s10, %s2637_s7  ;;  %p2644_p5 = scmp.lt.u32.totalorder %s2637_s7, %s4244_s10 }
 0x126   : > { %p2640_p8 = pnand %p2638_p3, %p4245_p2 }
 0x128   : > { %p2641_p9 = pneg %p2640_p8 }
 0x12a   : > { %p2646_p7 = pnand %p2644_p5, %p2641_p9 }
 0x12c   : > { %2649 = shalt.err (!%p2646_p7)
}
 0x12d   : > { %s2650_s2 = scalar_lea.vmem %s558_s29, 16  ;;  %s2657_s24 = scalar_lea.vmem %s558_s29, 32 }
 0x12e   : > { %p2651_p1 = scmp.ne.s32.totalorder %s558_s29, %s2650_s2  ;;  %p2658_p4 = scmp.lt.s32.totalorder %s558_s29, %s558_s29 }
 0x12f   : > { %p2659_p10 = scmp.lt.s32.totalorder %s2657_s24, %s2650_s2 }
 0x130   : > { %p2653_p11 = pnand %p2651_p1, %p4245_p2 }
 0x131   : > { %p2660_p13 = por %p2659_p10, %p2658_p4 }
 0x132   : > { %p2654_p6 = pneg %p2653_p11 }
 0x134   : > { %p2661_p12 = pnand %p2660_p13, %p2654_p6 }
 0x136   : > { %2664 = shalt.err (!%p2661_p12)
}
 0x137   : > { %p4246_p3 = scmp.ne.s32.totalorder %s4226_s6, 0  ;;  %s3126_s20 = smov [#allocation23]  }
 0x138   : > { %s581_s4 = sshll.u32 %s3126_s20, 4  ;;  %s3127_s15 = smov [#allocation26]   ;;  %s582_s4 = int_to_ptr.vmem [resolvable:$true] %s581_s4 }
 0x139   : > { %2188 = dma.hbm_to_vmem [thread:$0]  (!%p4246_p3), %s4244_s10, 16, %s558_s29, [#allocation19]  }
 0x13a   : > { %s605_s28 = sshll.u32 %s3127_s15, 4  ;;  %s4247_s12 = sld [smem:[#allocation71_spill]]  ;;  %s606_s28 = int_to_ptr.vmem [resolvable:$true] %s605_s28 }
 0x140   : > { %s2665_s18 = scalar_lea.hbm %s4247_s12, 16 }
 0x141   : > { %p2666_p12 = scmp.ne.s32.totalorder %s4247_s12, %s2665_s18  ;;  %p2672_p5 = scmp.lt.u32.totalorder %s2665_s18, %s4247_s12 }
 0x143   : > { %p2668_p8 = pnand %p2666_p12, %p4245_p2 }
 0x145   : > { %p2669_p9 = pneg %p2668_p8 }
 0x147   : > { %p2674_p7 = pnand %p2672_p5, %p2669_p9 }
 0x149   : > { %2677 = shalt.err (!%p2674_p7)
}
 0x14a   : > { %s2678_s29 = scalar_lea.vmem %s582_s4, 16  ;;  %s2685_s27 = scalar_lea.vmem %s582_s4, 32 }
 0x14b   : > { %p2679_p1 = scmp.ne.s32.totalorder %s582_s4, %s2678_s29  ;;  %p2686_p4 = scmp.lt.s32.totalorder %s582_s4, %s582_s4 }
 0x14c   : > { %p2687_p10 = scmp.lt.s32.totalorder %s2685_s27, %s2678_s29 }
 0x14d   : > { %p2681_p11 = pnand %p2679_p1, %p4245_p2 }
 0x14e   : > { %p2688_p13 = por %p2687_p10, %p2686_p4 }
 0x14f   : > { %p2682_p6 = pneg %p2681_p11 }
 0x151   : > { %p2689_p0 = pnand %p2688_p13, %p2682_p6 }
 0x153   : > { %2692 = shalt.err (!%p2689_p0)
}
 0x154   : > { %2194 = dma.hbm_to_vmem [thread:$0]  (!%p4246_p3), %s4247_s12, 16, %s582_s4, [#allocation22]  }
 0x155   : > { %s4248_s13 = sld [smem:[#allocation73_spill]] }
 0x15b   : > { %s2693_s18 = scalar_lea.hbm %s4248_s13, 16 }
 0x15c   : > { %p2694_p12 = scmp.ne.s32.totalorder %s4248_s13, %s2693_s18  ;;  %p2700_p0 = scmp.lt.u32.totalorder %s2693_s18, %s4248_s13 }
 0x15e   : > { %p2696_p8 = pnand %p2694_p12, %p4245_p2 }
 0x160   : > { %p2697_p9 = pneg %p2696_p8 }
 0x162   : > { %p2702_p5 = pnand %p2700_p0, %p2697_p9 }
 0x164   : > { %2705 = shalt.err (!%p2702_p5)
}
 0x165   : > { %s2706_s29 = scalar_lea.vmem %s606_s28, 16  ;;  %s2713_s4 = scalar_lea.vmem %s606_s28, 32 }
 0x166   : > { %p2707_p7 = scmp.ne.s32.totalorder %s606_s28, %s2706_s29  ;;  %p2714_p6 = scmp.lt.s32.totalorder %s606_s28, %s606_s28 }
 0x167   : > { %p2715_p4 = scmp.lt.s32.totalorder %s2713_s4, %s2706_s29 }
 0x168   : > { %p2709_p1 = pnand %p2707_p7, %p4245_p2 }
 0x169   : > { %p2716_p10 = por %p2715_p4, %p2714_p6 }
 0x16a   : > { %p2710_p11 = pneg %p2709_p1 }
 0x16c   : > { %p2717_p13 = pnand %p2716_p10, %p2710_p11 }
 0x16e   : > { %2720 = shalt.err (!%p2717_p13)
}
 0x16f   : > { %2200 = dma.hbm_to_vmem [thread:$0]  (!%p4246_p3), %s4248_s13, 16, %s606_s28, [#allocation25]  }
 0x170   : > { %s3128_s20 = smov [#allocation29]   ;;  %s4249_s16 = sld [smem:[#allocation75_spill]] }
 0x171   : > { %s627_s15 = sshll.u32 %s3128_s20, 4  ;;  %s628_s15 = int_to_ptr.vmem [resolvable:$true] %s627_s15 }
 0x176   : > { %s2721_s21 = scalar_lea.hbm %s4249_s16, 16 }
 0x177   : > { %p2722_p12 = scmp.ne.s32.totalorder %s4249_s16, %s2721_s21  ;;  %p2728_p0 = scmp.lt.u32.totalorder %s2721_s21, %s4249_s16 }
 0x179   : > { %p2724_p8 = pnand %p2722_p12, %p4245_p2 }
 0x17b   : > { %p2725_p9 = pneg %p2724_p8 }
 0x17d   : > { %p2730_p5 = pnand %p2728_p0, %p2725_p9 }
 0x17f   : > { %2733 = shalt.err (!%p2730_p5)
}
 0x180   : > { %s2734_s28 = scalar_lea.vmem %s628_s15, 16  ;;  %s2741_s27 = scalar_lea.vmem %s628_s15, 32 }
 0x181   : > { %p2735_p7 = scmp.ne.s32.totalorder %s628_s15, %s2734_s28  ;;  %p2742_p6 = scmp.lt.s32.totalorder %s628_s15, %s628_s15 }
 0x182   : > { %p2743_p4 = scmp.lt.s32.totalorder %s2741_s27, %s2734_s28 }
 0x183   : > { %p2737_p1 = pnand %p2735_p7, %p4245_p2 }
 0x184   : > { %p2744_p10 = por %p2743_p4, %p2742_p6 }
 0x185   : > { %p2738_p11 = pneg %p2737_p1 }
 0x187   : > { %p2745_p13 = pnand %p2744_p10, %p2738_p11 }
 0x189   : > { %2748 = shalt.err (!%p2745_p13)
}
 0x18a   : > { %s4250_s7 = sld [smem:[#allocation53_spill]]  ;;  %s4251_s18 = sld [smem:[#allocation50_spill]] }
 0x18b   : > { %s4252_s21 = sld [smem:[#allocation49_spill]]  ;;  %s1951_s6 = sadd.s32 4294967294, %s3113_s25  }
 0x18c   : > { %s4253_s22 = sld [smem:[#allocation48_spill]]  ;;  %s63_s2 = sadd.s32 1, %s3105_s23 }
 0x18d   : > { %2206 = dma.hbm_to_vmem [thread:$0]  (!%p4246_p3), %s4249_s16, 16, %s628_s15, [#allocation28]  }
 0x18e   : > { %p64_p2 = scmp.ge.s32.totalorder %s63_s2, 4  ;;  %p4255_p3 = scmp.eq.s32.totalorder %s3113_s25, 0 }
 0x18f   : > { %s4257_s4 = sld [smem:[#allocation47_spill]]  ;;  %p4258_p5 = scmp.eq.s32.totalorder %s3307_s26, 0 }
 0x190   : > { %s66_s24 = sadd.s32 1, %s4250_s7  ;;  %s73_s29 = sadd.s32 1, %s4251_s18 }
 0x191   : > { %p80_p12 = scmp.ne.s32.totalorder %s4251_s18, %s4252_s21  ;;  %s4334_s2 = smov (%p64_p2, %s63_s2), 0 }
 0x192   : > { %4254 = sst [smem:[#allocation55_spill]] %s4334_s2  ;;  %s4336_s24 = smov (!%p64_p2, %s66_s24), %s4250_s7 }
 0x193   : > { %p3676_p8 = por %p4255_p3, %p80_p12  ;;  %p86_p9 = scmp.ne.s32.totalorder %s4252_s21, %s4253_s22 }
 0x194   : > { %p68_p0 = scmp.ge.s32.totalorder %s4336_s24, 2  ;;  %s96_s28 = ssub.s32 %s3105_s23, %s4334_s2 }
 0x195   : > { %s4259_s27 = sld [smem:[#allocation46_spill]]  ;;  %p3689_p7 = por %p4258_p5, %p86_p9 }
 0x196   : > { %s4261_s20 = sld [smem:[#allocation45_spill]]  ;;  %p97_p1 = scmp.eq.s32.totalorder %s96_s28, 0 }
 0x197   : > { %s4260_s1 = scalar_select %p3689_p7, 1, 0 }
 0x198   : > { %s4338_s24 = smov (%p68_p0, %s4336_s24), 0  ;;  %s99_s3 = sadd.s32 1, %s3081_s19 }
 0x199   : > { %4262 = sst [smem:[#allocation56_spill]] %s4338_s24  ;;  %p481_p11 = scmp.eq.s32.totalorder %s3307_s26, 7 }
 0x19a   : > { %s70_s11 = ssub.s32 %s4250_s7, %s4338_s24  ;;  %p3699_p6 = scmp.eq.s32.totalorder %s1951_s6, 7 }
 0x19b   : > { %p71_p4 = scmp.eq.s32.totalorder %s70_s11, 0  ;;  %p3708_p10 = por %p481_p11, %p80_p12 }
 0x19c   : > { %s3713_s12 = scalar_select %p97_p1, %s3081_s19, %s99_s3  }
 0x19d   : > { %s4264_s10 = scalar_select %p3708_p10, 1, 0 }
 0x19e   : > { %4265 = sst [smem:[#allocation57_spill]] %s3713_s12  ;;  %p3723_p13 = por %p3699_p6, %p86_p9 }
 0x19f   : > { %s3716_s13 = scalar_select %p71_p4, %s4251_s18, %s73_s29  }
 0x1a0   : > { %s4267_s6 = scalar_select %p3723_p13, 1, 0 }
 0x1a1   : > { %4266 = sst [smem:[#allocation58_spill]] %s3716_s13  ;;  %s495_s16 = sor.u32 %s96_s28, %s70_s11 }
 0x1a2   : > { %p496_p2 = scmp.eq.s32.totalorder %s495_s16, 0  ;;  %s498_s24 = sadd.s32 1, %s4257_s4 }
 0x1a3   : > { %p508_p12 = scmp.ne.s32.totalorder %s4257_s4, %s4259_s27  ;;  %p514_p3 = scmp.ne.s32.totalorder %s4259_s27, %s4261_s20 }
 0x1a4   : > { %s4340_s4 = smov (!%p496_p2, %s4257_s4), %s498_s24  ;;  %s638_s22 = sand.u32 1, %s4251_s18  }
 0x1a5   : > { %p3737_p0 = por %p508_p12, %p481_p11  ;;  %p3743_p5 = por %p514_p3, %p3699_p6 }
 0x1a6   : > { %s1964_s29 = sshll.u32 %s4250_s7, 7  ;;  %s1963_s11 = sshll.u32 %s638_s22, 3 }
 0x1a7   : > { %s4268_s3 = scalar_select %p3737_p0, 1, 0 }
 0x1a8   : > { %s4269_s21 = scalar_select %p3743_p5, 1, 0 }
 0x1a9   : > { %s4270_s2 = sld [smem:[#allocation59_spill]]  ;;  %s642_s24 = scalar_lea.vmem [#allocation3], %s1963_s11 }
 0x1aa   : > { %s649_s27 = sshll.u32 %s642_s24, 4  ;;  %p4272_p9 = scmp.lt.s32.totalorder %s3113_s25, 8  ;;  %s3762_s27 = int_to_ptr.vmem [resolvable:$true] %s649_s27 }
 0x1ab   : > { %s3765_s7 = sshll.u32 %s3105_s23, 4  ;;  %s639_s18 = scalar_lea.sflag [#allocation4], %s638_s22 }
 0x1ac   : > { %p3758_p1 = pnand %p4272_p9, %p3676_p8 }
 0x1ae   : > { %p2751_p6 = pneg %p3758_p1 }
 0x1af   : > { %s4271_s13 = smov %s4270_s2  ;;  %s3752_s12 = scalar_lea.hbm %s4270_s2, %s1964_s29 }
 0x1b0   : > { %s2749_s2 = scalar_lea.hbm %s3752_s12, 128  ;;  %s2754_s29 = scalar_lea.hbm %s4271_s13, 256 }
 0x1b1   : > { %p2750_p11 = scmp.ne.s32.totalorder %s3752_s12, %s2749_s2  ;;  %p2755_p8 = scmp.lt.u32.totalorder %s3752_s12, %s4271_s13 }
 0x1b2   : > { %p2756_p12 = scmp.lt.u32.totalorder %s2754_s29, %s2749_s2  ;;  %p2758_p9 = scmp.lt.u32.totalorder %s2749_s2, %s3752_s12 }
 0x1b3   : > { %p2752_p4 = pnand %p2751_p6, %p2750_p11 }
 0x1b4   : > { %p2757_p3 = por %p2756_p12, %p2755_p8 }
 0x1b5   : > { %p2753_p2 = pneg %p2752_p4 }
 0x1b6   : > { %p2759_p5 = por %p2758_p9, %p2757_p3 }
 0x1b8   : > { %p2760_p13 = pnand %p2759_p5, %p2753_p2 }
 0x1ba   : > { %2763 = shalt.err (!%p2760_p13)
}
 0x1bb   : > { %s2764_s22 = scalar_lea.vmem %s3762_s27, 128  ;;  %s3129_s16 = smov [#allocation3]  }
 0x1bc   : > { %p2765_p11 = scmp.ne.s32.totalorder %s3762_s27, %s2764_s22  ;;  %s2769_s24 = sshll.u32 %s3129_s16, 4  ;;  %s2770_s24 = int_to_ptr.vmem [resolvable:$false] %s2769_s24 }
 0x1bd   : > { %s2771_s15 = scalar_lea.vmem %s2770_s24, 256  ;;  %p2772_p10 = scmp.lt.s32.totalorder %s3762_s27, %s2770_s24 }
 0x1be   : > { %p2767_p4 = pnand %p2765_p11, %p2751_p6  ;;  %p2773_p8 = scmp.lt.s32.totalorder %s2771_s15, %s2764_s22 }
 0x1c0   : > { %p2768_p0 = pneg %p2767_p4  ;;  %p2774_p12 = por %p2773_p8, %p2772_p10 }
 0x1c2   : > { %p2775_p3 = pnand %p2774_p12, %p2768_p0 }
 0x1c4   : > { %2778 = shalt.err (!%p2775_p3)
}
 0x1c5   : > { %2210 = dma.hbm_to_vmem [thread:$0]  (!%p3758_p1), %s3752_s12, 128, %s3762_s27, %s639_s18  }
 0x1c6   : > { %s4274_s29 = sld [smem:[#allocation61_spill]]  ;;  %s680_s22 = scalar_lea.vmem [#allocation8], %s3459_s14 }
 0x1c7   : > { %s687_s16 = sshll.u32 %s680_s22, 4  ;;  %p4276_p13 = scmp.ne.s32.totalorder %s4238_s30, 0  ;;  %s688_s16 = int_to_ptr.vmem [resolvable:$true] %s687_s16 }
 0x1cc   : > { %s4275_s11 = smov %s4274_s29  ;;  %s3796_s28 = scalar_lea.hbm %s4274_s29, %s3765_s7 }
 0x1cd   : > { %s2779_s24 = scalar_lea.hbm %s3796_s28, 16  ;;  %s2784_s12 = scalar_lea.hbm %s4275_s11, 64 }
 0x1ce   : > { %p2780_p10 = scmp.ne.s32.totalorder %s3796_s28, %s2779_s24  ;;  %p2785_p1 = scmp.lt.u32.totalorder %s3796_s28, %s4275_s11 }
 0x1cf   : > { %p2786_p6 = scmp.lt.u32.totalorder %s2784_s12, %s2779_s24  ;;  %p2788_p9 = scmp.lt.u32.totalorder %s2779_s24, %s3796_s28 }
 0x1d0   : > { %p2782_p0 = pnand %p2780_p10, %p4276_p13 }
 0x1d1   : > { %p2787_p2 = por %p2786_p6, %p2785_p1 }
 0x1d2   : > { %p2783_p5 = pneg %p2782_p0 }
 0x1d3   : > { %p2789_p11 = por %p2788_p9, %p2787_p2 }
 0x1d5   : > { %p2790_p4 = pnand %p2789_p11, %p2783_p5 }
 0x1d7   : > { %2793 = shalt.err (!%p2790_p4)
}
 0x1d8   : > { %s2794_s2 = scalar_lea.vmem %s688_s16, 16  ;;  %s3130_s20 = smov [#allocation8]  }
 0x1d9   : > { %p2795_p8 = scmp.ne.s32.totalorder %s688_s16, %s2794_s2  ;;  %s2799_s29 = sshll.u32 %s3130_s20, 4  ;;  %s2800_s29 = int_to_ptr.vmem [resolvable:$false] %s2799_s29 }
 0x1da   : > { %s2801_s22 = scalar_lea.vmem %s2800_s29, 32  ;;  %p2802_p10 = scmp.lt.s32.totalorder %s688_s16, %s2800_s29 }
 0x1db   : > { %p2797_p12 = pnand %p2795_p8, %p4276_p13  ;;  %p2803_p0 = scmp.lt.s32.totalorder %s2801_s22, %s2794_s2 }
 0x1dd   : > { %p2798_p3 = pneg %p2797_p12  ;;  %p2804_p7 = por %p2803_p0, %p2802_p10 }
 0x1df   : > { %p2805_p1 = pnand %p2804_p7, %p2798_p3 }
 0x1e1   : > { %2808 = shalt.err (!%p2805_p1)
}
 0x1e2   : > { %p4277_p6 = scmp.ne.s32.totalorder %s4237_s17, 0  ;;  %s4278_s24 = scalar_lea.sflag [#allocation7], %s3448_s8 }
 0x1e3   : > { %s4279_s12 = sld [smem:[#allocation63_spill]]  ;;  %s718_s18 = scalar_lea.vmem [#allocation11], %s3459_s14 }
 0x1e4   : > { %2216 = dma.hbm_to_vmem [thread:$0]  (!%p4277_p6), %s3796_s28, 16, %s688_s16, %s4278_s24  }
 0x1e5   : > { %s725_s2 = sshll.u32 %s718_s18, 4  ;;  %s726_s2 = int_to_ptr.vmem [resolvable:$true] %s725_s2 }
 0x1e9   : > { %s3822_s27 = scalar_lea.hbm %s4279_s12, %s3765_s7  ;;  %s2814_s28 = scalar_lea.hbm %s4279_s12, 64 }
 0x1ea   : > { %s2809_s20 = scalar_lea.hbm %s3822_s27, 16  ;;  %p2815_p9 = scmp.lt.u32.totalorder %s3822_s27, %s4279_s12 }
 0x1eb   : > { %p2810_p7 = scmp.ne.s32.totalorder %s3822_s27, %s2809_s20  ;;  %p2816_p11 = scmp.lt.u32.totalorder %s2814_s28, %s2809_s20 }
 0x1ec   : > { %p2818_p8 = scmp.lt.u32.totalorder %s2809_s20, %s3822_s27 }
 0x1ed   : > { %p2812_p5 = pnand %p2810_p7, %p4276_p13  ;;  %p2817_p4 = por %p2816_p11, %p2815_p9 }
 0x1ef   : > { %p2813_p2 = pneg %p2812_p5  ;;  %p2819_p12 = por %p2818_p8, %p2817_p4 }
 0x1f1   : > { %p2820_p3 = pnand %p2819_p12, %p2813_p2 }
 0x1f3   : > { %2823 = shalt.err (!%p2820_p3)
}
 0x1f4   : > { %s2824_s5 = scalar_lea.vmem %s726_s2, 16  ;;  %s3131_s15 = smov [#allocation11]  }
 0x1f5   : > { %p2825_p10 = scmp.ne.s32.totalorder %s726_s2, %s2824_s5  ;;  %s2829_s18 = sshll.u32 %s3131_s15, 4  ;;  %s2830_s18 = int_to_ptr.vmem [resolvable:$false] %s2829_s18 }
 0x1f6   : > { %s2831_s29 = scalar_lea.vmem %s2830_s18, 32  ;;  %p2832_p7 = scmp.lt.s32.totalorder %s726_s2, %s2830_s18 }
 0x1f7   : > { %p2827_p0 = pnand %p2825_p10, %p4276_p13  ;;  %p2833_p5 = scmp.lt.s32.totalorder %s2831_s29, %s2824_s5 }
 0x1f9   : > { %p2828_p1 = pneg %p2827_p0  ;;  %p2834_p6 = por %p2833_p5, %p2832_p7 }
 0x1fb   : > { %p2835_p9 = pnand %p2834_p6, %p2828_p1 }
 0x1fd   : > { %2838 = shalt.err (!%p2835_p9)
}
 0x1fe   : > { %p4280_p11 = scmp.ne.s32.totalorder %s4237_s17, 0  ;;  %s4281_s20 = scalar_lea.sflag [#allocation10], %s3448_s8 }
 0x1ff   : > { %s4282_s16 = sld [smem:[#allocation65_spill]]  ;;  %s756_s5 = scalar_lea.vmem [#allocation14], %s3459_s14 }
 0x200   : > { %2222 = dma.hbm_to_vmem [thread:$0]  (!%p4280_p11), %s3822_s27, 16, %s726_s2, %s4281_s20  }
 0x201   : > { %s763_s15 = sshll.u32 %s756_s5, 4  ;;  %s764_s15 = int_to_ptr.vmem [resolvable:$true] %s763_s15 }
 0x205   : > { %s3848_s24 = scalar_lea.hbm %s4282_s16, %s3765_s7  ;;  %s2844_s27 = scalar_lea.hbm %s4282_s16, 64 }
 0x206   : > { %s2839_s18 = scalar_lea.hbm %s3848_s24, 16  ;;  %p2845_p8 = scmp.lt.u32.totalorder %s3848_s24, %s4282_s16 }
 0x207   : > { %p2840_p6 = scmp.ne.s32.totalorder %s3848_s24, %s2839_s18  ;;  %p2846_p12 = scmp.lt.u32.totalorder %s2844_s27, %s2839_s18 }
 0x208   : > { %p2848_p10 = scmp.lt.u32.totalorder %s2839_s18, %s3848_s24 }
 0x209   : > { %p2842_p2 = pnand %p2840_p6, %p4276_p13  ;;  %p2847_p3 = por %p2846_p12, %p2845_p8 }
 0x20b   : > { %p2843_p4 = pneg %p2842_p2  ;;  %p2849_p0 = por %p2848_p10, %p2847_p3 }
 0x20d   : > { %p2850_p1 = pnand %p2849_p0, %p2843_p4 }
 0x20f   : > { %2853 = shalt.err (!%p2850_p1)
}
 0x210   : > { %s2854_s7 = scalar_lea.vmem %s764_s15, 16  ;;  %s3132_s22 = smov [#allocation14]  }
 0x211   : > { %p2855_p7 = scmp.ne.s32.totalorder %s764_s15, %s2854_s7  ;;  %s2859_s28 = sshll.u32 %s3132_s22, 4  ;;  %s2860_s28 = int_to_ptr.vmem [resolvable:$false] %s2859_s28 }
 0x212   : > { %s2861_s11 = scalar_lea.vmem %s2860_s28, 32  ;;  %p2862_p6 = scmp.lt.s32.totalorder %s764_s15, %s2860_s28 }
 0x213   : > { %p2857_p5 = pnand %p2855_p7, %p4276_p13  ;;  %p2863_p2 = scmp.lt.s32.totalorder %s2861_s11, %s2854_s7 }
 0x215   : > { %p2858_p9 = pneg %p2857_p5  ;;  %p2864_p11 = por %p2863_p2, %p2862_p6 }
 0x217   : > { %p2865_p8 = pnand %p2864_p11, %p2858_p9 }
 0x219   : > { %2868 = shalt.err (!%p2865_p8)
}
 0x21a   : > { %p4283_p12 = scmp.ne.s32.totalorder %s4237_s17, 0  ;;  %s4284_s5 = scalar_lea.sflag [#allocation13], %s3448_s8 }
 0x21b   : > { %s1977_s18 = sshll.u32 %s3459_s14, 2  ;;  %s1978_s29 = sshll.u32 %s3105_s23, 6 }
 0x21c   : > { %2228 = dma.hbm_to_vmem [thread:$0]  (!%p4283_p12), %s3848_s24, 16, %s764_s15, %s4284_s5  }
 0x21d   : > { %s4285_s20 = sld [smem:[#allocation66_spill]]  ;;  %s774_s7 = scalar_lea.vmem [#allocation15], %s1977_s18 }
 0x21e   : > { %s781_s28 = sshll.u32 %s774_s7, 4  ;;  %s771_s11 = scalar_lea.sflag [#allocation16], %s3448_s8  ;;  %s782_s28 = int_to_ptr.vmem [resolvable:$true] %s781_s28 }
 0x223   : > { %s4286_s12 = smov %s4285_s20  ;;  %s3875_s22 = scalar_lea.hbm %s4285_s20, %s1978_s29 }
 0x224   : > { %s2869_s13 = scalar_lea.hbm %s3875_s22, 64  ;;  %s2874_s15 = scalar_lea.hbm %s4286_s12, 256 }
 0x225   : > { %p2870_p11 = scmp.ne.s32.totalorder %s3875_s22, %s2869_s13  ;;  %p2875_p10 = scmp.lt.u32.totalorder %s3875_s22, %s4286_s12 }
 0x226   : > { %p2876_p0 = scmp.lt.u32.totalorder %s2874_s15, %s2869_s13  ;;  %p2878_p7 = scmp.lt.u32.totalorder %s2869_s13, %s3875_s22 }
 0x227   : > { %p2872_p4 = pnand %p2870_p11, %p4276_p13 }
 0x228   : > { %p2877_p1 = por %p2876_p0, %p2875_p10 }
 0x229   : > { %p2873_p3 = pneg %p2872_p4 }
 0x22a   : > { %p2879_p5 = por %p2878_p7, %p2877_p1 }
 0x22c   : > { %p2880_p9 = pnand %p2879_p5, %p2873_p3 }
 0x22e   : > { %2883 = shalt.err (!%p2880_p9)
}
 0x22f   : > { %s2884_s8 = scalar_lea.vmem %s782_s28, 64  ;;  %s3133_s18 = smov [#allocation15]  }
 0x230   : > { %p2885_p6 = scmp.ne.s32.totalorder %s782_s28, %s2884_s8  ;;  %s2889_s27 = sshll.u32 %s3133_s18, 4  ;;  %s2890_s27 = int_to_ptr.vmem [resolvable:$false] %s2889_s27 }
 0x231   : > { %s2891_s2 = scalar_lea.vmem %s2890_s27, 128  ;;  %p2892_p11 = scmp.lt.s32.totalorder %s782_s28, %s2890_s27 }
 0x232   : > { %p2887_p2 = pnand %p2885_p6, %p4276_p13  ;;  %p2893_p4 = scmp.lt.s32.totalorder %s2891_s2, %s2884_s8 }
 0x234   : > { %p2888_p8 = pneg %p2887_p2  ;;  %p2894_p12 = por %p2893_p4, %p2892_p11 }
 0x236   : > { %p2895_p0 = pnand %p2894_p12, %p2888_p8 }
 0x238   : > { %2898 = shalt.err (!%p2895_p0)
}
 0x239   : > { %p4287_p10 = scmp.ne.s32.totalorder %s4237_s17, 0  ;;  %s4288_s13 = sld [smem:[#allocation54_spill]] }
 0x23b   : > { %2231 = dma.hbm_to_vmem [thread:$0]  (!%p4287_p10), %s3875_s22, 64, %s782_s28, %s771_s11  }
 0x23f   : > { %p4289_p3 = scmp.ne.s32.totalorder %s4288_s13, 0 }
 0x240   : > { %s4290_s20 = sld [smem:[#allocation49_spill]] (!%p4289_p3)  ;;  %p4291_p13 = scmp.ne.s32.totalorder (!%p4289_p3), %s4260_s1, 0 }
 0x241   : > { %790 = sbr.rel (%p4289_p3) target bundleno = 2950 (0xb86), region = 88 }
 0x246   : > { %s3898_s30 = sand.u32 (!%p4289_p3), 1, %s4290_s20  }
 0x247   : > { %s1980_s7 = sshll.u32 (!%p4289_p3), %s3898_s30, 3  ;;  %s793_s14 = scalar_lea.sflag (!%p4289_p3), [#allocation4], %s3898_s30 }
 0x248   : > { %s3904_s24 = scalar_lea.vmem [#allocation3], %s1980_s7 }
 0x249   : > { %3012 = dma.done.wait (%p4291_p13), %s793_s14, 128  }
 0x24a   : > { %3014 = vsyncadd (%p4291_p13), %s793_s14, 4294967168  ;;  %s801_s17 = sand.u32 1, %s3307_s26   ;;  %s3912_s22 = sand.u32 1, %s3077_s0  }
 0x24b   : > { %s3915_s28 = sshll.u32 %s3912_s22, 4  ;;  %s802_s11 = scalar_lea.sflag [#allocation7], %s801_s17 }
 0x24c   : > { %s805_s15 = scalar_lea.vmem [#allocation6], %s3915_s28  ;;  %p4292_p12 = scmp.ne.s32.totalorder %s4234_s9, 0 }
 0x24e   : > { %3016 = dma.done.wait (%p4292_p12), %s802_s11, 272  }
 0x24f   : > { %3018 = vsyncadd (%p4292_p12), %s802_s11, 4294967024  ;;  %s813_s1 = scalar_lea.vmem [#allocation8], %s3912_s22  ;;  %s819_s5 = scalar_lea.sflag [#allocation10], %s801_s17 }
 0x250   : > { %s822_s29 = scalar_lea.vmem [#allocation9], %s3915_s28 }
 0x251   : > { %3020 = dma.done.wait (%p4292_p12), %s819_s5, 272  }
 0x252   : > { %3022 = vsyncadd (%p4292_p12), %s819_s5, 4294967024  ;;  %s830_s8 = scalar_lea.vmem [#allocation11], %s3912_s22  ;;  %s836_s18 = scalar_lea.sflag [#allocation13], %s801_s17 }
 0x253   : > { %s839_s27 = scalar_lea.vmem [#allocation12], %s3915_s28 }
 0x254   : > { %3024 = dma.done.wait (%p4292_p12), %s836_s18, 272  }
 0x255   : > { %3026 = vsyncadd (%p4292_p12), %s836_s18, 4294967024  ;;  %s1984_s2 = sshll.u32 %s3912_s22, 2  ;;  %s847_s13 = scalar_lea.vmem [#allocation14], %s3912_s22 }
 0x256   : > { %s853_s20 = scalar_lea.sflag [#allocation16], %s801_s17  ;;  %s3936_s14 = scalar_lea.vmem [#allocation15], %s1984_s2 }
 0x257   : > { %3028 = dma.done.wait (%p4292_p12), %s853_s20, 64  }
 0x258   : > { %3030 = vsyncadd (%p4292_p12), %s853_s20, 4294967232  ;;  %p4293_p1 = scmp.eq.s32.totalorder %s3307_s26, 0 }
 0x25a   : > { %3032 = dma.done.wait (%p4293_p1), [#allocation16], 16   ;;  %p4294_p7 = pmov %p4293_p1 }
 0x25b   : > { %p4295_p5 = pmov %p4293_p1 }
 0x25c   : > { %3034 = vsyncadd (%p4294_p7), [#allocation16], 4294967280 }
 0x25d   : > { %3036 = dma.done.wait (%p4295_p5), [#allocation19], 32   ;;  %p4296_p9 = pmov %p4293_p1 }
 0x25e   : > { %p4297_p6 = pmov %p4293_p1 }
 0x25f   : > { %3038 = vsyncadd (%p4296_p9), [#allocation19], 4294967264 }
 0x260   : > { %3040 = dma.done.wait (%p4297_p6), [#allocation22], 272   ;;  %p4298_p2 = pmov %p4293_p1 }
 0x261   : > { %p4299_p8 = pmov %p4293_p1 }
 0x262   : > { %3042 = vsyncadd (%p4298_p2), [#allocation22], 4294967024 }
 0x263   : > { %3044 = dma.done.wait (%p4299_p8), [#allocation25], 528   ;;  %p4300_p11 = pmov %p4293_p1 }
 0x264   : > { %p4301_p4 = pmov %p4293_p1 }
 0x265   : > { %3046 = vsyncadd (%p4300_p11), [#allocation25], 4294966768 }
 0x266   : > { %3048 = dma.done.wait (%p4301_p4), [#allocation28], 32   ;;  %p4302_p0 = pmov %p4293_p1 }
 0x267   : > { %s4303_s9 = sld [smem:[#allocation46_spill]]  ;;  %s3969_s5 = scalar_lea.vmem [#allocation30], %s1980_s7 }
 0x268   : > { %3050 = vsyncadd (%p4302_p0), [#allocation28], 4294967264  ;;  %s4304_s2 = sld [smem:[#allocation51_spill]] }
 0x26d   : > { %s979_s17 = sand.u32 1, %s4303_s9  }
 0x26e   : > { %s3965_s11 = sshll.u32 %s979_s17, 3  ;;  %p1996_p10 = scmp.ne.s32.totalorder %s4304_s2, 0 }
 0x26f   : > { %s981_s18 = scalar_lea.vmem [#allocation31], %s3965_s11  ;;  %vm987_vm0 = vcmask (!%p1996_p10), 261120   ;;  %v3134_v0 = vmov (!%p1996_p10), 0.0  }
 0x270   : > { %986 = sbr.rel (%p1996_p10) target bundleno = 631 (0x277), region = 160  ;;  %988 = vst.msk [vmem:[#allocation2] sm:$0xff] (!%p1996_p10), %vm987_vm0, %v3134_v0 }
 0x277 PF: > { %v2387_v1 = vld [vmem:[%s822_s29] sm:$0xff]   ;;  %v3135_v2 = vmov 0.0   ;;  %v2388_v3 = vld [vmem:[%s822_s29 + $0x8] sm:$0xff]   ;;  %vm3136_vm1 = vmmov 0   ;;  %vm1014_vm2 = vcmask 261120   ;;  %vm1187_vm3 = vcmask 64512  }
 0x278   : > { %2069 = vmatprep.subr.bf16.mxu1 %v3135_v2  ;;  %2061 = vmatprep.subr.bf16.mxu0 %v3135_v2  ;;  %v2389_v4 = vld [vmem:[%s805_s15] sm:$0xff]   ;;  %v989_v5 = vld [vmem:[%s3904_s24] sm:$0xff]  ;;  %v2001_v8 = vld [vmem:[%s830_s8] ss:$0 sm:$0xff]  ;;  %vm1250_vm4 = vcmask 1043456   ;;  %s4305_s26 = sld [smem:[#allocation51_spill]] }
 0x279   : > { %2070 = vmatpush3.bf16.msra.mxu1 %v2387_v1  ;;  %2073 = vmatprep.mubr.msk.bf16.mxu1 %vm3136_vm1, %v3135_v2  ;;  %v2390_v6 = vld [vmem:[%s805_s15 + $0x8] sm:$0xff]   ;;  %v990_v7 = vpack.c.bf16 %v989_v5, %v989_v5 }
 0x27a   : > { %2071 = vmatprep.subr.bf16.mxu1 %v3135_v2  ;;  %2065 = vmatprep.mubr.msk.bf16.mxu0 %vm3136_vm1, %v3135_v2  ;;  %v1997_v13 = vld [vmem:[%s813_s1] ss:$0 sm:$0xff]  ;;  %v2392_v24 = vld [vmem:[%s839_s27 + $0x8] sm:$0xff]  }
 0x27b   : > { %2062 = vmatpush3.bf16.msra.mxu0 %v2389_v4  ;;  %v2391_v23 = vld [vmem:[%s839_s27] sm:$0xff]  }
 0x27c   : > { %2063 = vmatprep.subr.bf16.mxu0 %v3135_v2  ;;  %v2005_v38 = vld [vmem:[%s847_s13] ss:$0 sm:$0xff] }
 0x27d   : > { %2072 = vmatpush3.bf16.msra.mxu1 %v2388_v3  ;;  %v1295_v43 = vld [vmem:[%s3936_s14] sm:$0xf] }
 0x27e   : > { %2085 = vmatprep.subr.bf16.mxu1 %v3135_v2  ;;  %v1300_v44 = vsel %vm1250_vm4, %v1295_v43, 0  ;;  %v1342_v54 = vld [vmem:[#allocation2] sm:$0xff]  ;;  %p2012_p3 = scmp.ne.s32.totalorder %s4305_s26, 3 }
 0x27f   : > { %2064 = vmatpush3.bf16.msra.mxu0 %v2390_v6  ;;  %v2013_v61 = vld [vmem:[#allocation17] ss:$0 sm:$0xff] (!%p2012_p3)  ;;  %v1358_v62 = vld [vmem:[%s3904_s24] sm:$0xff] (!%p2012_p3)  ;;  %vm3138_vm5 = vmmov (!%p2012_p3), 0   ;;  %vm1498_vm6 = vcmask (!%p2012_p3), 523264  }
 0x280   : > { %2074 = vmatmul.mubr.msk.bf16.vlgmr.msra.gmra.mrb[0].mxu1 %vm1014_vm2, %v990_v7  ;;  %2077 = vmatprep.subr.bf16.mxu0 %v3135_v2 }
 0x281   : > { %2087 = vmatprep.mubr.msk.bf16.mxu1 %vm3136_vm1, %v3135_v2 }
 0x282   : > { %2066 = vmatmul.mubr.msk.bf16.vlgmr.msra.gmra.mrb[0].mxu0 %vm1014_vm2, %v990_v7 }
 0x283   : > { %2081 = vmatprep.mubr.msk.bf16.mxu0 %vm3136_vm1, %v3135_v2  ;;  %2078 = vmatpush3.bf16.msra.mxu0 %v2391_v23  ;;  %v2402_v23 = vld [vmem:[#allocation24 + $0x18] sm:$0xff] (!%p2012_p3)  }
 0x284   : > { %2079 = vmatprep.subr.bf16.mxu0 %v3135_v2 }
 0x287   : > { %2080 = vmatpush3.bf16.msra.mxu0 %v2392_v24  ;;  %v2016_v24 = vld [vmem:[#allocation23] ss:$0 sm:$0xff] (!%p2012_p3) }
 0x288   : > { %2091 = vmatprep.subr.bf16.mxu0 %v3135_v2 }
 0x28a   : > { %2082 = vmatmul.mubr.msk.bf16.vlgmr.msra.gmra.mrb[4].mxu0 %vm1014_vm2, %v990_v7  ;;  %v2397_v7 = vld [vmem:[#allocation21] sm:$0xff] (!%p2012_p3)  }
 0x28b   : > { %2093 = vmatprep.mubr.msk.bf16.mxu0 %vm3136_vm1, %v3135_v2 }
 0x353   : > { %v1115_v9 = vpop.f32.mrb[0].mxu1 }
 0x354   : > { %v1116_v10 = vadd.f32 %v2001_v8, %v1115_v9  ;;  %v2075_v11 = vpop.f32.mrb[1].mxu1  ;;  %v3137_v8 = vmov (!%p2012_p3), 0.0   ;;  %v2398_v9 = vld [vmem:[#allocation21 + $0x8] sm:$0xff] (!%p2012_p3)  }
 0x355   : > { %v1118_v12 = vpop.f32.mrb[2].mxu1  ;;  %v1052_v14 = vpop.f32.mrb[0].mxu0  ;;  %v2400_v11 = vld [vmem:[#allocation24 + $0x8] sm:$0xff] (!%p2012_p3)  }
 0x356   : > { %v1185_v15 = vpack.c.bf16 %v1116_v10, %v1116_v10  ;;  %v2076_v16 = vpop.f32.mrb[3].mxu1  ;;  %v2067_v17 = vpop.f32.mrb[1].mxu0  ;;  %v1053_v20 = vadd.f32 %v1997_v13, %v1052_v14  ;;  %v2399_v10 = vld [vmem:[#allocation24] sm:$0xff] (!%p2012_p3)  }
 0x357   : > { %v1055_v18 = vpop.f32.mrb[2].mxu0  ;;  %v2014_v16 = vld [vmem:[#allocation18] ss:$0 sm:$0xff] (!%p2012_p3) }
 0x358   : > { %v1192_v19 = vsel %vm1187_vm3, %v1185_v15, 0  ;;  %v2068_v21 = vpop.f32.mrb[3].mxu0  ;;  %v1184_v22 = vpack.c.bf16 %v1053_v20, %v1053_v20  ;;  %v2015_v18 = vld [vmem:[#allocation20] ss:$0 sm:$0xff] (!%p2012_p3) }
 0x359   : > { %2086 = vmatpush3.bf16.xpose.msra.mxu1 %v1192_v19 }
 0x35a   : > { %2097 = vmatprep.subr.bf16.mxu1 %v3135_v2 }
 0x35d   : > { %v1178_v35 = vpop.f32.mrb[4].mxu0 }
 0x35e   : > { %v2083_v36 = vpop.f32.mrb[5].mxu0  ;;  %v1179_v40 = vadd.f32 %v2005_v38, %v1178_v35 }
 0x35f   : > { %v1181_v37 = vpop.f32.mrb[6].mxu0 }
 0x360   : > { %2088 = vmatmul.mubr.msk.bf16.vlgmr.msra.gmra.mrb[4].mxu1 %vm1187_vm3, %v1184_v22  ;;  %v2084_v39 = vpop.f32.mrb[7].mxu0  ;;  %v1186_v41 = vpack.c.bf16 %v1179_v40, %v1179_v40  ;;  %v2401_v22 = vld [vmem:[#allocation24 + $0x10] sm:$0xff] (!%p2012_p3)  }
 0x361   : > { %2099 = vmatprep.mubr.msk.bf16.mxu1 %vm3136_vm1, %v3135_v2  ;;  %2098 = vmatpush3.bf16.msra.mxu1 %v1300_v44 }
 0x362   : > { %v1252_v42 = vsel %vm1250_vm4, %v1186_v41, 0  ;;  %2111 = vmatprep.subr.bf16.mxu1 (!%p2012_p3), %v3137_v8 }
 0x363   : > { %2092 = vmatpush3.bf16.msra.mxu0 %v1252_v42 }
 0x364   : > { %2103 = vmatprep.subr.bf16.mxu0 (!%p2012_p3), %v3137_v8 }
 0x433   : > { %v1228_v25 = vpop.f32.mrb[4].mxu1 }
 0x434   : > { %v2089_v26 = vpop.f32.mrb[5].mxu1  ;;  %v1234_v27 = vsel %vm1187_vm3, %v1228_v25, -inf }
 0x435   : > { %1235 = vmax.xlane.f32.xlu0 %v1234_v27  ;;  %v1231_v28 = vpop.f32.mrb[6].mxu1 }
 0x436   : > { %v2090_v29 = vpop.f32.mrb[7].mxu1 }
 0x4c2   : > { %v1236_v30 = vpop.xlane.xlu0 %1235 }
 0x4c3   : > { %v1237_v31 = vsub.f32 %v1228_v25, %v1236_v30 }
 0x4c5   : > { %v1238_v32 = vmul.f32 1.442695, %v1237_v31 }
 0x4c7   : > { %2393 = vpow2.f32 %v1238_v32  ;;  %v2020_v32 = vld [vmem:[#allocation26] ss:$0 sm:$0xff] (!%p2012_p3) }
 0x4d1   : > { %v2394_v33 = vpop.eup %2393 }
 0x4d2   : > { %v1240_v34 = vsel %vm1187_vm3, %v2394_v33, 0.0 }
 0x4d3   : > { %1241 = vadd.xlane.f32.xlu0 %v1240_v34 }
 0x560   : > { %v1242_v45 = vpop.xlane.xlu0 %1241 }
 0x561   : > { %2395 = vrcp.f32 %v1242_v45 }
 0x56b   : > { %v2396_v46 = vpop.eup %2395 }
 0x56c   : > { %v1244_v47 = vmul.f32 %v2396_v46, %v2394_v33 }
 0x56e   : > { %1245 = vst.msk [vmem:[%s981_s18] sm:$0xff] %vm1187_vm3, %v1244_v47  ;;  %v1246_v48 = vpack.c.bf16 %v1244_v47, %v1244_v47 }
 0x570   : > { %2094 = vmatmul.mubr.msk.bf16.vlgmr.msra.gmra.mrb[8].mxu0 %vm1187_vm3, %v1246_v48 }
 0x571   : > { %2107 = vmatprep.mubr.msk.bf16.mxu0 (!%p2012_p3), %vm3138_vm5, %v3137_v8  ;;  %2104 = vmatpush3.bf16.msra.mxu0 (!%p2012_p3), %v2397_v7 }
 0x572   : > { %2105 = vmatprep.subr.bf16.mxu0 (!%p2012_p3), %v3137_v8 }
 0x575   : > { %2106 = vmatpush3.bf16.msra.mxu0 (!%p2012_p3), %v2398_v9 }
 0x643   : > { %v1288_v49 = vpop.f32.mrb[8].mxu0 }
 0x644   : > { %v1294_v50 = vpack.c.bf16 %v1288_v49, %v1288_v49  ;;  %v2095_v51 = vpop.f32.mrb[9].mxu0  ;;  %v2026_v49 = vld [vmem:[#allocation27] ss:$0 sm:$0xff] (!%p2012_p3) }
 0x645   : > { %v1291_v52 = vpop.f32.mrb[10].mxu0  ;;  %v2027_v51 = vld [vmem:[#allocation29] ss:$0 sm:$0xff] (!%p2012_p3) }
 0x646   : > { %v2096_v53 = vpop.f32.mrb[11].mxu0  ;;  %2100 = vmatmul.mubr.msk.bf16.vlgmr.msra.gmra.mrb[8].mxu1 %vm1187_vm3, %v1294_v50 }
 0x647   : > { %2119 = vmatprep.mubr.msk.bf16.mxu1 (!%p2012_p3), %vm3138_vm5, %v3137_v8  ;;  %2112 = vmatpush3.bf16.msra.mxu1 (!%p2012_p3), %v2399_v10 }
 0x648   : > { %2113 = vmatprep.subr.bf16.mxu1 (!%p2012_p3), %v3137_v8 }
 0x64b   : > { %2114 = vmatpush3.bf16.msra.mxu1 (!%p2012_p3), %v2400_v11 }
 0x64c   : > { %2115 = vmatprep.subr.bf16.mxu1 (!%p2012_p3), %v3137_v8 }
 0x64f   : > { %2116 = vmatpush3.bf16.msra.mxu1 (!%p2012_p3), %v2401_v22 }
 0x650   : > { %2117 = vmatprep.subr.bf16.mxu1 (!%p2012_p3), %v3137_v8 }
 0x653   : > { %2118 = vmatpush3.bf16.msra.mxu1 (!%p2012_p3), %v2402_v23 }
 0x716   : > { %1348 = sbr.rel (%p2012_p3) target bundleno = 2895 (0xb4f), region = 164 }
 0x719   : > { %v1336_v55 = vpop.f32.mrb[8].mxu1 }
 0x71a   : > { %v1343_v56 = vadd.f32 %v1342_v54, %v1336_v55  ;;  %v2101_v57 = vpop.f32.mrb[9].mxu1 }
 0x71b   : > { %v1339_v58 = vpop.f32.mrb[10].mxu1 }
 0x71c   : > { %1344 = vst.msk [vmem:[#allocation2] sm:$0xff] %vm1014_vm2, %v1343_v56  ;;  %v2102_v59 = vpop.f32.mrb[11].mxu1 }
 0x723   : > { %v1349_v60 = vld [vmem:[#allocation2] sm:$0xff] }
 0x724   : > { %v1357_v63 = vadd.f32 %v2013_v61, %v1349_v60 }
 0x726   : > { %v1359_v0 = vadd.f32 %v1358_v62, %v1357_v63 }
 0x728   : > { %v1362_v1 = vsel %vm1014_vm2, %v1359_v0, 0.0 }
 0x729   : > { %1363 = vadd.xlane.f32.xlu0 %v1362_v1 }
 0x7b6   : > { %v1364_v2 = vpop.xlane.xlu0 %1363 }
 0x7b7   : > { %v1366_v3 = vmul.f32 0.03125, %v1364_v2 }
 0x7b9   : > { %v1367_v4 = vsub.f32 %v1359_v0, %v1366_v3 }
 0x7bb   : > { %v1368_v5 = vmul.f32 %v1367_v4, %v1367_v4 }
 0x7bd   : > { %v1369_v6 = vsel %vm1014_vm2, %v1368_v5, 0.0 }
 0x7be   : > { %1370 = vadd.xlane.f32.xlu0 %v1369_v6 }
 0x84b   : > { %v1371_v12 = vpop.xlane.xlu0 %1370 }
 0x84c   : > { %v1372_v13 = vmul.f32 0.03125, %v1371_v12 }
 0x84e   : > { %v1373_v14 = vadd.f32 1e-05, %v1372_v13 }
 0x850   : > { %2403 = vrsqrt.f32 %v1373_v14 }
 0x85a   : > { %v2404_v15 = vpop.eup %2403 }
 0x85b   : > { %v1375_v17 = vmul.f32 %v2404_v15, %v1367_v4 }
 0x85d   : > { %v1382_v19 = vmul.f32 %v2014_v16, %v1375_v17 }
 0x85f   : > { %v1389_v20 = vadd.f32 %v2015_v18, %v1382_v19 }
 0x861   : > { %v1390_v21 = vpack.c.bf16 %v1389_v20, %v1389_v20 }
 0x863   : > { %2108 = vmatmul.mubr.msk.bf16.vlgmr.msra.gmra.mrb[0].mxu0 %vm1014_vm2, %v1390_v21 }
 0x936   : > { %v1451_v25 = vpop.f32.mrb[0].mxu0 }
 0x937   : > { %v1452_v26 = vadd.f32 %v2016_v24, %v1451_v25  ;;  %v2109_v27 = vpop.f32.mrb[1].mxu0 }
 0x938   : > { %v1454_v28 = vpop.f32.mrb[2].mxu0 }
 0x939   : > { %v1457_v29 = vmax.f32 %v1452_v26, 0.0  ;;  %v2110_v30 = vpop.f32.mrb[3].mxu0 }
 0x93b   : > { %v1458_v31 = vpack.c.bf16 %v1457_v29, %v1457_v29 }
 0x93d   : > { %2120 = vmatmul.mubr.msk.bf16.vlgmr.msra.gmra.mrb[0].mxu1 %vm1498_vm6, %v1458_v31 }
 0xa10   : > { %v1536_v33 = vpop.f32.mrb[0].mxu1 }
 0xa11   : > { %v1537_v34 = vadd.f32 %v2020_v32, %v1536_v33  ;;  %v2121_v35 = vpop.f32.mrb[1].mxu1 }
 0xa12   : > { %v1539_v36 = vpop.f32.mrb[2].mxu1 }
 0xa13   : > { %v2122_v37 = vpop.f32.mrb[3].mxu1  ;;  %v1542_v38 = vadd.f32 %v1537_v34, %v1389_v20 }
 0xa15   : > { %v1545_v39 = vsel %vm1014_vm2, %v1542_v38, 0.0 }
 0xa16   : > { %1546 = vadd.xlane.f32.xlu1 %v1545_v39 }
 0xaa3   : > { %v1547_v40 = vpop.xlane.xlu1 %1546 }
 0xaa4   : > { %v1548_v41 = vmul.f32 0.03125, %v1547_v40 }
 0xaa6   : > { %v1549_v42 = vsub.f32 %v1542_v38, %v1548_v41 }
 0xaa8   : > { %v1550_v43 = vmul.f32 %v1549_v42, %v1549_v42 }
 0xaaa   : > { %v1551_v44 = vsel %vm1014_vm2, %v1550_v43, 0.0 }
 0xaab   : > { %1552 = vadd.xlane.f32.xlu1 %v1551_v44 }
 0xb38   : > { %v1553_v45 = vpop.xlane.xlu1 %1552 }
 0xb39   : > { %v1554_v46 = vmul.f32 0.03125, %v1553_v45 }
 0xb3b   : > { %v1555_v47 = vadd.f32 1e-05, %v1554_v46 }
 0xb3d   : > { %2405 = vrsqrt.f32 %v1555_v47 }
 0xb47   : > { %v2406_v48 = vpop.eup %2405 }
 0xb48   : > { %v1557_v50 = vmul.f32 %v2406_v48, %v1549_v42 }
 0xb4a   : > { %v1564_v52 = vmul.f32 %v2026_v49, %v1557_v50 }
 0xb4c   : > { %v1571_v53 = vadd.f32 %v2027_v51, %v1564_v52 }
 0xb4e   : > { %1572 = vst.msk [vmem:[%s3969_s5] sm:$0xff] %vm1014_vm2, %v1571_v53 }
 0xb4f PF: > { %s4306_s7 = sld [smem:[#allocation52_spill]]  ;;  %s4307_s15 = sld [smem:[#allocation76_spill]] }
 0xb50   : > { %s1592_s29 = sshll.u32 %s3969_s5, 4  ;;  %s1574_s8 = scalar_lea.sflag [#allocation5], %s3898_s30  ;;  %s1593_s29 = int_to_ptr.vmem [resolvable:$true] %s1592_s29 }
 0xb51   : > { %s2899_s27 = scalar_lea.vmem %s1593_s29, 128  ;;  %p4308_p12 = scmp.ne.s32.totalorder %s4264_s10, 0 }
 0xb52   : > { %p2900_p13 = scmp.ne.s32.totalorder %s1593_s29, %s2899_s27  ;;  %s3139_s13 = smov [#allocation30]  }
 0xb53   : > { %s2903_s20 = sshll.u32 %s3139_s13, 4  ;;  %s2904_s20 = int_to_ptr.vmem [resolvable:$false] %s2903_s20 }
 0xb54   : > { %p2901_p1 = pnand %p2900_p13, %p4308_p12  ;;  %s2905_s14 = scalar_lea.vmem %s2904_s20, 256 }
 0xb55   : > { %s2030_s24 = sshll.u32 %s4306_s7, 7  ;;  %p2906_p5 = scmp.lt.s32.totalorder %s1593_s29, %s2904_s20 }
 0xb56   : > { %s4025_s1 = scalar_lea.hbm %s4307_s15, %s2030_s24  ;;  %p2902_p7 = pneg %p2901_p1 }
 0xb57   : > { %p2907_p9 = scmp.lt.s32.totalorder %s2905_s14, %s2899_s27 }
 0xb59   : > { %p2908_p6 = por %p2907_p9, %p2906_p5 }
 0xb5b   : > { %p2909_p2 = pnand %p2908_p6, %p2902_p7 }
 0xb5d   : > { %2912 = shalt.err (!%p2909_p2)
}
 0xb5e   : > { %s2913_s30 = scalar_lea.hbm %s4025_s1, 128  ;;  %s2917_s2 = scalar_lea.hbm %s4307_s15, 256 }
 0xb5f   : > { %p2914_p8 = scmp.ne.s32.totalorder %s4025_s1, %s2913_s30  ;;  %p2918_p0 = scmp.lt.u32.totalorder %s4025_s1, %s4307_s15 }
 0xb60   : > { %p2919_p10 = scmp.lt.u32.totalorder %s2917_s2, %s2913_s30  ;;  %p2921_p13 = scmp.lt.u32.totalorder %s2913_s30, %s4025_s1 }
 0xb61   : > { %p2915_p11 = pnand %p2914_p8, %p4308_p12 }
 0xb62   : > { %p2920_p3 = por %p2919_p10, %p2918_p0 }
 0xb63   : > { %p2916_p4 = pneg %p2915_p11 }
 0xb64   : > { %p2922_p1 = por %p2921_p13, %p2920_p3 }
 0xb66   : > { %p2923_p7 = pnand %p2922_p1, %p2916_p4 }
 0xb68   : > { %2926 = shalt.err (!%p2923_p7)
}
 0xb69   : > { %s4309_s22 = sld [smem:[#allocation51_spill]]  ;;  %s2031_s27 = sshll.u32 %s4306_s7, 2 }
 0xb6a   : > { %2175 = dma.vmem_to_hbm [thread:$0]  (%p4308_p12), %s1593_s29, 128, %s4025_s1, %s1574_s8  }
 0xb6b   : > { %s1607_s13 = sshll.u32 %s981_s18, 4  ;;  %s4311_s10 = sld [smem:[#allocation77_spill]]  ;;  %s4050_s13 = int_to_ptr.vmem [resolvable:$true] %s1607_s13 }
 0xb6c   : > { %s1579_s2 = scalar_lea.sflag [#allocation32], %s979_s17  ;;  %s2927_s26 = scalar_lea.vmem %s4050_s13, 128 }
 0xb6d   : > { %p2928_p5 = scmp.ne.s32.totalorder %s4050_s13, %s2927_s26  ;;  %p4312_p9 = scmp.ne.s32.totalorder %s4268_s3, 0 }
 0xb6e   : > { %s3140_s11 = smov [#allocation31]  }
 0xb6f   : > { %s1603_s20 = sadd.s32 %s4309_s22, %s2031_s27  ;;  %p2929_p12 = pnand %p2928_p5, %p4312_p9 }
 0xb70   : > { %s2032_s14 = sshll.u32 %s1603_s20, 7  ;;  %s2931_s18 = sshll.u32 %s3140_s11, 4  ;;  %s2932_s18 = int_to_ptr.vmem [resolvable:$false] %s2931_s18 }
 0xb71   : > { %s1605_s5 = scalar_lea.hbm %s4311_s10, %s2032_s14  ;;  %p2930_p6 = pneg %p2929_p12 }
 0xb72   : > { %s2933_s7 = scalar_lea.vmem %s2932_s18, 256  ;;  %p2934_p2 = scmp.lt.s32.totalorder %s4050_s13, %s2932_s18 }
 0xb73   : > { %p2935_p8 = scmp.lt.s32.totalorder %s2933_s7, %s2927_s26 }
 0xb75   : > { %p2936_p11 = por %p2935_p8, %p2934_p2 }
 0xb77   : > { %p2937_p4 = pnand %p2936_p11, %p2930_p6 }
 0xb79   : > { %2940 = shalt.err (!%p2937_p4)
}
 0xb7a   : > { %s2941_s1 = scalar_lea.hbm %s1605_s5, 128  ;;  %s2945_s8 = scalar_lea.hbm %s4311_s10, 1024 }
 0xb7b   : > { %p2942_p0 = scmp.ne.s32.totalorder %s1605_s5, %s2941_s1  ;;  %p2946_p13 = scmp.lt.u32.totalorder %s1605_s5, %s4311_s10 }
 0xb7c   : > { %p2947_p1 = scmp.lt.u32.totalorder %s2945_s8, %s2941_s1  ;;  %p2949_p5 = scmp.lt.u32.totalorder %s2941_s1, %s1605_s5 }
 0xb7d   : > { %p2943_p10 = pnand %p2942_p0, %p4312_p9 }
 0xb7e   : > { %p2948_p7 = por %p2947_p1, %p2946_p13 }
 0xb7f   : > { %p2944_p3 = pneg %p2943_p10 }
 0xb80   : > { %p2950_p12 = por %p2949_p5, %p2948_p7 }
 0xb82   : > { %p2951_p6 = pnand %p2950_p12, %p2944_p3 }
 0xb84   : > { %2954 = shalt.err (!%p2951_p6)
}
 0xb85   : > { %2176 = dma.vmem_to_hbm [thread:$0]  (%p4312_p9), %s4050_s13, 128, %s1605_s5, %s1579_s2  }
 0xb86 PF: > { %s4313_s28 = sld [smem:[#allocation48_spill]]  ;;  %p2258_p2 = scmp.ge.s32.totalorder %s3113_s25, 2 }
 0xb87   : > { %p4314_p8 = scmp.ne.s32.totalorder %s4267_s6, 0 }
 0xb89   : > { %p2233_p11 = pnand %p2258_p2, %p4314_p8 }
 0xb8c   : > { %s1619_s27 = sand.u32 1, %s4313_s28  }
 0xb8d   : > { %s1620_s20 = scalar_lea.sflag [#allocation5], %s1619_s27 }
 0xb8e   : > { %3052 = dma.done.wait (!%p2233_p11), %s1620_s20, 128  }
 0xb8f   : > { %3054 = vsyncadd (!%p2233_p11), %s1620_s20, 4294967168  ;;  %s4315_s14 = sld [smem:[#allocation45_spill]]  ;;  %p4316_p4 = scmp.ne.s32.totalorder %s4269_s21, 0 }
 0xb91   : > { %p2236_p0 = pnand %p2258_p2, %p4316_p4 }
 0xb95   : > { %s1628_s30 = sand.u32 1, %s4315_s14  }
 0xb96   : > { %s1629_s9 = scalar_lea.sflag [#allocation32], %s1628_s30 }
 0xb97   : > { %3056 = dma.done.wait (!%p2236_p0), %s1629_s9, 128  }
 0xb98   : > { %3058 = vsyncadd (!%p2236_p0), %s1629_s9, 4294967168  ;;  %s54_s25 = sadd.s32 1, %s3113_s25   ;;  %s4318_s27 = sld [smem:[#allocation46_spill]] }
 0xb99   : > { %p4081_p9 = scmp.ge.s32.totalorder %s54_s25, 10   ;;  %s4319_s28 = sld [smem:[#allocation47_spill]] }
 0xb9a   : > { %s4320_s6 = sld [smem:[#allocation57_spill]]  ;;  %s4321_s1 = sld [smem:[#allocation49_spill]] }
 0xb9b   : > { %s4322_s20 = sld [smem:[#allocation50_spill]]  ;;  %s4323_s21 = sld [smem:[#allocation58_spill]] }
 0xb9c   : > { %s4324_s2 = sld [smem:[#allocation53_spill]]  ;;  %s4325_s13 = sld [smem:[#allocation55_spill]] }
 0xb9d   : > { %s4326_s24 = sld [smem:[#allocation56_spill]]  ;;  %s4327_s29 = smov %s4340_s4 }
 0xb9e   : > { %s4328_s30 = smov %s3077_s0  ;;  %s4329_s0 = smov %s3081_s19 }
 0xb9f   : > { %s4331_s22 = smov %s3105_s23  ;;  %53 = sbr.rel (!%p4081_p9) target bundleno = 44 (0x2c), region = 279 }
 0xba0   : > { %s4330_s19 = smov %s4320_s6 }
 0xba2   : > { %s4332_s23 = smov %s4325_s13 }
 0xba6   :  { %1634 = vsyncpa [#allocation4], 1 }
 0xba7   :  { %1636 = vsyncpa [#allocation4 + $0x1], 1 }
 0xba8   :  { %1637 = vsyncpa [#allocation7], 1 }
 0xba9   :  { %1639 = vsyncpa [#allocation7 + $0x1], 1 }
 0xbaa   :  { %1640 = vsyncpa [#allocation10], 1 }
 0xbab   :  { %1642 = vsyncpa [#allocation10 + $0x1], 1 }
 0xbac   :  { %1643 = vsyncpa [#allocation13], 1 }
 0xbad   :  { %1645 = vsyncpa [#allocation13 + $0x1], 1 }
 0xbae   :  { %1646 = vsyncpa [#allocation16], 1 }
 0xbaf   :  { %1648 = vsyncpa [#allocation16 + $0x1], 1 }
 0xbb0   :  { %1649 = vsyncpa [#allocation19], 1 }
 0xbb1   :  { %1650 = vsyncpa [#allocation22], 1 }
 0xbb2   :  { %1651 = vsyncpa [#allocation25], 1 }
 0xbb3   :  { %1652 = vsyncpa [#allocation28], 1 }
 0xbb4   :  { %1653 = vsyncpa [#allocation5], 1 }
 0xbb5   :  { %1655 = vsyncpa [#allocation5 + $0x1], 1 }
 0xbb6   :  { %1656 = vsyncpa [#allocation32], 1 }
 0xbb7   :  { %1658 = vsyncpa [#allocation32 + $0x1], 1 }

</bundles_post_ra>
